<compile_context>
chip_gen: v5e
topology: v5e:2x2
jax: 0.10.0
libtpu: 0.0.40
codegen_flags: <defaults>
</compile_context>

<pallas_src>
import math
from functools import partial

import jax
import jax.numpy as jnp
from jax import lax
from jax.experimental import pallas as pl
from jax.experimental.pallas import tpu as pltpu

# ---------------- ModelArgs (defaults of the dataclass) ----------------
DIM = 64
N_HEADS = 8
HEAD_DIM = DIM // N_HEADS
MULTIPLE_OF = 256
NORM_EPS = 1e-5
MAX_SEQ_LEN = 100
INPUT_DIM = 2
OUTPUT_DIM = 1          # output projection implemented as a lane reduction (needs OUTPUT_DIM == 1)


def _ffn_hidden(dim, multiple_of):
    hidden = int(2 * (4 * dim) / 3)
    return multiple_of * ((hidden + multiple_of - 1) // multiple_of)


HIDDEN = _ffn_hidden(DIM, MULTIPLE_OF)      # 256 for dim=64


def _round_up(x, m):
    return ((x + m - 1) // m) * m


# ---------------- the Pallas kernel (one batch block per grid step) ----------------
def transformer_kernel(
    tok_flat_ref,          # (BB*S, INPUT_DIM)  tokens, batch-major flattened
    tok_last_ref,          # (BB, INPUT_DIM)    last-position tokens
    in_w_ref, in_b_ref,    # (INPUT_DIM, D), (1, D)
    anorm_ref,             # (1, D)
    wqr_ref,               # (D, 2D)  = [Wq | Wq_pairswap]
    wkvr_ref,              # (D, 3D)  = [Wk | Wk_pairswap | Wv]
    cos_ref, sins_ref,     # (BB*S, D) rotary tables (cos, signed sin), tiled over BB
    headmask_ref,          # (D, D)    block-diagonal ones: 1 iff same head
    expand_ref,            # (BB*S, BB) one-hot: row r -> its batch element
    expand_t_ref,          # (BB, BB*S) transpose of the above (segment-sum matrix)
    wo_ref,                # (D, D)
    fnorm_ref,             # (1, D)
    w13_ref,               # (D, 2H) = [W1 | W3]
    w2_ref,                # (H, D)
    nrm_ref,               # (1, D)
    outw_ref,              # (1, D)  output projection weight as a row
    o_ref,                 # (BB, OUTPUT_DIM)
    *, seqlen):

    f32 = jnp.float32
    S = seqlen

    def embed(x2):
        # Linear(INPUT_DIM -> D) + SiLU on the VPU (K=2 would waste the MXU).
        h = (x2[:, 0:1] * in_w_ref[0:1, :]
             + x2[:, 1:2] * in_w_ref[1:2, :]
             + in_b_ref[...])
        return h * jax.nn.sigmoid(h)

    def rmsnorm(x, w_ref):
        ms = jnp.mean(x * x, axis=-1, keepdims=True)
        return x * lax.rsqrt(ms + NORM_EPS) * w_ref[...]

    # -------- all positions: keys & values (big-M fused matmul) --------
    x_all = tok_flat_ref[...].astype(f32)                          # (BB*S, In)
    h_all = embed(x_all)                                           # (BB*S, D)
    xn_all = rmsnorm(h_all, anorm_ref)                             # (BB*S, D)
    kvr = jnp.dot(xn_all, wkvr_ref[...],
                  preferred_element_type=f32)                      # (BB*S, 3D)
    # rotary on K: pair-swap already folded into the weight columns.
    k = kvr[:, 0:DIM] * cos_ref[...] + kvr[:, DIM:2 * DIM] * sins_ref[...]
    v = kvr[:, 2 * DIM:3 * DIM]

    # -------- last position only: queries --------
    x_last = tok_last_ref[...].astype(f32)                         # (BB, In)
    h_last = embed(x_last)                                         # (BB, D)
    xn_last = rmsnorm(h_last, anorm_ref)
    qq = jnp.dot(xn_last, wqr_ref[...], preferred_element_type=f32)   # (BB, 2D)
    cos_last = cos_ref[S - 1:S, :]                                 # (1, D)
    sin_last = sins_ref[S - 1:S, :]
    q = (qq[:, 0:DIM] * cos_last + qq[:, DIM:2 * DIM] * sin_last)
    q = q * (1.0 / math.sqrt(HEAD_DIM))                            # fold 1/sqrt(hd) into q

    # -------- attention: last query vs. all keys, fully vectorized --------
    # Causal mask row for the last query position is all zeros -> no mask needed.
    q_bcast = jnp.dot(expand_ref[...], q, preferred_element_type=f32)        # (BB*S, D)
    s_full = jnp.dot(k * q_bcast, headmask_ref[...],
                     preferred_element_type=f32)                             # (BB*S, D)
    # Global per-head max is a valid shift for every segment's softmax
    # (softmax is shift-invariant; the global max >= each segment max).
    m = jnp.max(s_full, axis=0, keepdims=True)                               # (1, D)
    p = jnp.exp(s_full - m)                                                  # (BB*S, D)
    cat = jnp.concatenate([p, p * v], axis=-1)                               # (BB*S, 2D)
    seg = jnp.dot(expand_t_ref[...], cat, preferred_element_type=f32)        # (BB, 2D)
    denom = jnp.maximum(seg[:, 0:DIM], 1e-30)
    ctx = seg[:, DIM:2 * DIM] / denom                                        # (BB, D)

    # -------- wo + residual + FFN + final norm + output (last rows only) --------
    h1 = h_last + jnp.dot(ctx, wo_ref[...], preferred_element_type=f32)
    xn2 = rmsnorm(h1, fnorm_ref)
    ab = jnp.dot(xn2, w13_ref[...], preferred_element_type=f32)    # (BB, 2H)
    a = ab[:, 0:HIDDEN]
    b = ab[:, HIDDEN:2 * HIDDEN]
    ff = jnp.dot(a * jax.nn.sigmoid(a) * b, w2_ref[...], preferred_element_type=f32)
    h2 = h1 + ff
    hn = rmsnorm(h2, nrm_ref)
    # output projection (D -> 1) as VPU multiply + lane reduction, one store per block.
    o_ref[...] = jnp.sum(hn * outw_ref[...], axis=-1, keepdims=True)


# ---------------- rotary tables ----------------
def precompute_freqs_cos_sin(dim, end, theta=10000.0):
    freqs = 1.0 / theta ** (jnp.arange(0, dim, 2)[: dim // 2].astype(jnp.float32) / dim)
    t = jnp.arange(end, dtype=jnp.float32)
    freqs = jnp.outer(t, freqs)                                    # (end, dim//2)
    return jnp.cos(freqs), jnp.sin(freqs)


# ---------------- parameters ----------------
def init_params(key):
    ks = jax.random.split(key, 10)

    def lin(k, fan_in, fan_out):
        bound = 1.0 / math.sqrt(fan_in)
        return jax.random.uniform(k, (fan_in, fan_out), jnp.float32, -bound, bound)

    b_in = 1.0 / math.sqrt(INPUT_DIM)
    return dict(
        in_w=lin(ks[0], INPUT_DIM, DIM),
        in_b=jax.random.uniform(ks[1], (1, DIM), jnp.float32, -b_in, b_in),
        anorm=jnp.ones((1, DIM), jnp.float32),
        wq=lin(ks[2], DIM, DIM),
        wk=lin(ks[3], DIM, DIM),
        wv=lin(ks[4], DIM, DIM),
        wo=lin(ks[5], DIM, DIM),
        fnorm=jnp.ones((1, DIM), jnp.float32),
        w1=lin(ks[6], DIM, HIDDEN),
        w3=lin(ks[7], DIM, HIDDEN),
        w2=lin(ks[8], HIDDEN, DIM),
        norm=jnp.ones((1, DIM), jnp.float32),
        out_w=lin(ks[9], DIM, OUTPUT_DIM),
    )


# ---------------- wrapper ----------------
def transformer_forward(tokens, params, start_pos=0, block_batch=None):
    tokens = tokens.astype(jnp.float32)
    B, S, in_dim = tokens.shape
    assert in_dim == INPUT_DIM and OUTPUT_DIM == 1

    # Batch block: multiple of 8 (sublane tiling); 16 keeps the per-step VMEM
    # footprint comfortably inside the default scoped VMEM at S=100 while still
    # giving BB*S-row matmuls.
    bb = block_batch if block_batch is not None else min(16, _round_up(B, 8))
    BB = _round_up(bb, 8)
    B_pad = _round_up(B, BB)
    if B_pad != B:
        tokens = jnp.pad(tokens, ((0, B_pad - B), (0, 0), (0, 0)))

    tok_flat = tokens.reshape(B_pad * S, INPUT_DIM)                # (B_pad*S, In)
    tok_last = tokens[:, S - 1, :]                                 # (B_pad, In)

    # rotary tables expanded to (S, D), then tiled over the batch block
    cos_all, sin_all = precompute_freqs_cos_sin(HEAD_DIM, MAX_SEQ_LEN * 2)
    cos = cos_all[start_pos:start_pos + S]                         # (S, hd/2)
    sin = sin_all[start_pos:start_pos + S]
    cos_full = jnp.tile(jnp.repeat(cos, 2, axis=-1), (1, N_HEADS))                       # (S, D)
    sin_signed = jnp.tile(jnp.stack([-sin, sin], axis=-1).reshape(S, HEAD_DIM),
                          (1, N_HEADS))                                                  # (S, D)
    cos_t = jnp.tile(cos_full, (BB, 1)).astype(jnp.float32)        # (BB*S, D)
    sins_t = jnp.tile(sin_signed, (BB, 1)).astype(jnp.float32)     # (BB*S, D)

    # adjacent-pair swap folded into the projection weights:
    #   (x @ W)[:, j^1] == x @ W[:, j^1]
    swap = jnp.arange(DIM) ^ 1
    wqr = jnp.concatenate([params["wq"], params["wq"][:, swap]], axis=1)                  # (D, 2D)
    wkvr = jnp.concatenate([params["wk"], params["wk"][:, swap], params["wv"]], axis=1)   # (D, 3D)
    w13 = jnp.concatenate([params["w1"], params["w3"]], axis=1)                           # (D, 2H)

    # head block-diagonal mask: 1 iff two channel indices belong to the same head
    head_id = jnp.arange(DIM) // HEAD_DIM
    headmask = (head_id[:, None] == head_id[None, :]).astype(jnp.float32)                # (D, D)

    # one-hot segment expander (row -> batch element) and its transpose
    rows = BB * S
    row_seg = jnp.arange(rows) // S
    expand = (row_seg[:, None] == jnp.arange(BB)[None, :]).astype(jnp.float32)           # (rows, BB)
    expand_t = expand.T                                                                   # (BB, rows)

    outw_row = params["out_w"].T                                   # (1, D)

    def _inv(arr):
        return pl.BlockSpec(arr.shape, lambda i: (0, 0))

    in_specs = [
        pl.BlockSpec((BB * S, INPUT_DIM), lambda i: (i, 0)),       # tok_flat
        pl.BlockSpec((BB, INPUT_DIM), lambda i: (i, 0)),           # tok_last
        _inv(params["in_w"]), _inv(params["in_b"]),
        _inv(params["anorm"]),
        _inv(wqr), _inv(wkvr),
        _inv(cos_t), _inv(sins_t),
        _inv(headmask), _inv(expand), _inv(expand_t),
        _inv(params["wo"]),
        _inv(params["fnorm"]),
        _inv(w13), _inv(params["w2"]),
        _inv(params["norm"]),
        _inv(outw_row),
    ]
    out_specs = pl.BlockSpec((BB, OUTPUT_DIM), lambda i: (i, 0))

    kernel = partial(transformer_kernel, seqlen=S)

    out = pl.pallas_call(
        kernel,
        out_shape=jax.ShapeDtypeStruct((B_pad, OUTPUT_DIM), jnp.float32),
        grid_spec=pltpu.PrefetchScalarGridSpec(
            num_scalar_prefetch=0,
            grid=(B_pad // BB,),
            in_specs=in_specs,
            out_specs=out_specs,
        ),
        compiler_params=pltpu.CompilerParams(dimension_semantics=("parallel",)),
    )(
        tok_flat, tok_last,
        params["in_w"], params["in_b"],
        params["anorm"],
        wqr, wkvr,
        cos_t, sins_t,
        headmask, expand, expand_t,
        params["wo"],
        params["fnorm"],
        w13, params["w2"],
        params["norm"],
        outw_row,
    )
    return out[:B]                                                 # (B, OUTPUT_DIM)


# ---------------- pure-JAX reference (mirrors the PyTorch forward) ----------------
def transformer_reference(tokens, params, start_pos=0):
    B, S, _ = tokens.shape
    x = tokens.astype(jnp.float32)

    def rms(v, w):
        return v * lax.rsqrt(jnp.mean(v * v, axis=-1, keepdims=True) + NORM_EPS) * w

    h = jax.nn.silu(x @ params["in_w"] + params["in_b"])           # (B, S, D)
    xn = rms(h, params["anorm"])
    q = (xn @ params["wq"]).reshape(B, S, N_HEADS, HEAD_DIM // 2, 2)
    k = (xn @ params["wk"]).reshape(B, S, N_HEADS, HEAD_DIM // 2, 2)
    v = (xn @ params["wv"]).reshape(B, S, N_HEADS, HEAD_DIM)

    cos_all, sin_all = precompute_freqs_cos_sin(HEAD_DIM, MAX_SEQ_LEN * 2)
    cos = cos_all[start_pos:start_pos + S][None, :, None, :]
    sin = sin_all[start_pos:start_pos + S][None, :, None, :]

    def rope(t):
        tr = t[..., 0] * cos - t[..., 1] * sin
        ti = t[..., 1] * cos + t[..., 0] * sin
        return jnp.stack([tr, ti], axis=-1).reshape(B, S, N_HEADS, HEAD_DIM)

    q, k = rope(q), rope(k)
    scores = jnp.einsum("bqhd,bkhd->bhqk", q, k) / math.sqrt(HEAD_DIM)
    row = jnp.arange(S)[:, None]
    col = jnp.arange(S)[None, :]
    scores = scores + jnp.where(col - row >= start_pos + 1, -jnp.inf, 0.0)
    p = jax.nn.softmax(scores, axis=-1)
    ctx = jnp.einsum("bhqk,bkhd->bqhd", p, v).reshape(B, S, DIM)
    h = h + ctx @ params["wo"]
    xn2 = rms(h, params["fnorm"])
    h = h + (jax.nn.silu(xn2 @ params["w1"]) * (xn2 @ params["w3"])) @ params["w2"]
    hn = rms(h, params["norm"])
    return hn[:, -1, :] @ params["out_w"]                          # (B, OUTPUT_DIM)


if __name__ == "__main__":
    key = jax.random.PRNGKey(0)
    pkey, dkey = jax.random.split(key)
    params = init_params(pkey)

    B, S = 16, 12
    tokens = jax.random.normal(dkey, (B, S, INPUT_DIM), dtype=jnp.float32)

    out = transformer_forward(tokens, params, start_pos=0, block_batch=8)  # grid of 2 blocks
    out = jax.block_until_ready(out)
    assert out.shape == (B, OUTPUT_DIM) and out.dtype == jnp.float32

    ref = jax.block_until_ready(transformer_reference(tokens, params, start_pos=0))
    err = float(jnp.max(jnp.abs(out - ref)))
    assert err < 1e-3, f"kernel/reference mismatch: max abs err {err}"

    print("KERNEL_OK")
</pallas_src>

<mosaic_0001>
module attributes {stable_mosaic.version = 11 : i64} {
  func.func @transformer_kernel(%arg0: i32, %arg1: memref<96x2xf32, #tpu.memory_space<vmem>>, %arg2: memref<8x2xf32, #tpu.memory_space<vmem>>, %arg3: memref<2x64xf32, #tpu.memory_space<vmem>>, %arg4: memref<1x64xf32, #tpu.memory_space<vmem>>, %arg5: memref<1x64xf32, #tpu.memory_space<vmem>>, %arg6: memref<64x128xf32, #tpu.memory_space<vmem>>, %arg7: memref<64x192xf32, #tpu.memory_space<vmem>>, %arg8: memref<96x64xf32, #tpu.memory_space<vmem>>, %arg9: memref<96x64xf32, #tpu.memory_space<vmem>>, %arg10: memref<64x64xf32, #tpu.memory_space<vmem>>, %arg11: memref<96x8xf32, #tpu.memory_space<vmem>>, %arg12: memref<8x96xf32, #tpu.memory_space<vmem>>, %arg13: memref<64x64xf32, #tpu.memory_space<vmem>>, %arg14: memref<1x64xf32, #tpu.memory_space<vmem>>, %arg15: memref<64x512xf32, #tpu.memory_space<vmem>>, %arg16: memref<256x64xf32, #tpu.memory_space<vmem>>, %arg17: memref<1x64xf32, #tpu.memory_space<vmem>>, %arg18: memref<1x64xf32, #tpu.memory_space<vmem>>, %arg19: memref<8x1xf32, #tpu.memory_space<vmem>>) attributes {dimension_semantics = [#tpu.dimension_semantics<parallel>], iteration_bounds = array<i64: 2>, scalar_prefetch = 0 : i64, scratch_operands = 0 : i64, tpu.core_type = #tpu.core_type<tc>, window_params = [{transform_indices = @transform_0, window_bounds = array<i64: 96, 2>}, {transform_indices = @transform_1, window_bounds = array<i64: 8, 2>}, {pipeline_mode = #tpu.pipeline_mode<synchronous>, transform_indices = @transform_2, window_bounds = array<i64: 2, 64>}, {pipeline_mode = #tpu.pipeline_mode<synchronous>, transform_indices = @transform_3, window_bounds = array<i64: 1, 64>}, {pipeline_mode = #tpu.pipeline_mode<synchronous>, transform_indices = @transform_4, window_bounds = array<i64: 1, 64>}, {pipeline_mode = #tpu.pipeline_mode<synchronous>, transform_indices = @transform_5, window_bounds = array<i64: 64, 128>}, {pipeline_mode = #tpu.pipeline_mode<synchronous>, transform_indices = @transform_6, window_bounds = array<i64: 64, 192>}, {pipeline_mode = #tpu.pipeline_mode<synchronous>, transform_indices = @transform_7, window_bounds = array<i64: 96, 64>}, {pipeline_mode = #tpu.pipeline_mode<synchronous>, transform_indices = @transform_8, window_bounds = array<i64: 96, 64>}, {pipeline_mode = #tpu.pipeline_mode<synchronous>, transform_indices = @transform_9, window_bounds = array<i64: 64, 64>}, {pipeline_mode = #tpu.pipeline_mode<synchronous>, transform_indices = @transform_10, window_bounds = array<i64: 96, 8>}, {pipeline_mode = #tpu.pipeline_mode<synchronous>, transform_indices = @transform_11, window_bounds = array<i64: 8, 96>}, {pipeline_mode = #tpu.pipeline_mode<synchronous>, transform_indices = @transform_12, window_bounds = array<i64: 64, 64>}, {pipeline_mode = #tpu.pipeline_mode<synchronous>, transform_indices = @transform_13, window_bounds = array<i64: 1, 64>}, {pipeline_mode = #tpu.pipeline_mode<synchronous>, transform_indices = @transform_14, window_bounds = array<i64: 64, 512>}, {pipeline_mode = #tpu.pipeline_mode<synchronous>, transform_indices = @transform_15, window_bounds = array<i64: 256, 64>}, {pipeline_mode = #tpu.pipeline_mode<synchronous>, transform_indices = @transform_16, window_bounds = array<i64: 1, 64>}, {pipeline_mode = #tpu.pipeline_mode<synchronous>, transform_indices = @transform_17, window_bounds = array<i64: 1, 64>}, {transform_indices = @transform_18, window_bounds = array<i64: 8, 1>}]} {
    %c0 = arith.constant 0 : index
    %c0_0 = arith.constant 0 : index
    %0 = vector.load %arg1[%c0, %c0_0] : memref<96x2xf32, #tpu.memory_space<vmem>>, vector<96x2xf32>
    %1 = vector.extract_strided_slice %0 {offsets = [0, 0], sizes = [96, 1], strides = [1, 1]} : vector<96x2xf32> to vector<96x1xf32>
    %c0_1 = arith.constant 0 : index
    %c0_2 = arith.constant 0 : index
    %2 = vector.load %arg3[%c0_1, %c0_2] : memref<2x64xf32, #tpu.memory_space<vmem>>, vector<1x64xf32>
    %3 = vector.broadcast %1 : vector<96x1xf32> to vector<96x64xf32>
    %4 = vector.broadcast %2 : vector<1x64xf32> to vector<96x64xf32>
    %5 = arith.mulf %3, %4 : vector<96x64xf32>
    %6 = vector.extract_strided_slice %0 {offsets = [0, 1], sizes = [96, 1], strides = [1, 1]} : vector<96x2xf32> to vector<96x1xf32>
    %c1 = arith.constant 1 : index
    %c0_3 = arith.constant 0 : index
    %7 = vector.load %arg3[%c1, %c0_3] : memref<2x64xf32, #tpu.memory_space<vmem>>, vector<1x64xf32>
    %8 = vector.broadcast %6 : vector<96x1xf32> to vector<96x64xf32>
    %9 = vector.broadcast %7 : vector<1x64xf32> to vector<96x64xf32>
    %10 = arith.mulf %8, %9 : vector<96x64xf32>
    %11 = arith.addf %5, %10 : vector<96x64xf32>
    %c0_4 = arith.constant 0 : index
    %c0_5 = arith.constant 0 : index
    %12 = vector.load %arg4[%c0_4, %c0_5] : memref<1x64xf32, #tpu.memory_space<vmem>>, vector<1x64xf32>
    %13 = vector.broadcast %12 : vector<1x64xf32> to vector<96x64xf32>
    %14 = arith.addf %11, %13 : vector<96x64xf32>
    %15 = arith.negf %14 : vector<96x64xf32>
    %16 = math.exp %15 : vector<96x64xf32>
    %cst = arith.constant 1.000000e+00 : f32
    %17 = vector.broadcast %cst : f32 to vector<96x64xf32>
    %18 = arith.addf %17, %16 : vector<96x64xf32>
    %19 = arith.divf %17, %18 : vector<96x64xf32>
    %20 = arith.mulf %14, %19 : vector<96x64xf32>
    %21 = arith.mulf %20, %20 : vector<96x64xf32>
    %cst_6 = arith.constant dense<0.000000e+00> : vector<96xf32>
    %22 = vector.multi_reduction <add>, %21, %cst_6 [1] : vector<96x64xf32> to vector<96xf32>
    %23 = vector.shape_cast %22 : vector<96xf32> to vector<96x1xf32>
    %cst_7 = arith.constant 6.400000e+01 : f32
    %24 = vector.broadcast %cst_7 : f32 to vector<96x1xf32>
    %25 = arith.divf %23, %24 : vector<96x1xf32>
    %cst_8 = arith.constant 9.99999974E-6 : f32
    %26 = vector.broadcast %cst_8 : f32 to vector<96x1xf32>
    %27 = arith.addf %25, %26 : vector<96x1xf32>
    %28 = math.rsqrt %27 : vector<96x1xf32>
    %29 = vector.broadcast %28 : vector<96x1xf32> to vector<96x64xf32>
    %30 = arith.mulf %20, %29 : vector<96x64xf32>
    %c0_9 = arith.constant 0 : index
    %c0_10 = arith.constant 0 : index
    %31 = vector.load %arg5[%c0_9, %c0_10] : memref<1x64xf32, #tpu.memory_space<vmem>>, vector<1x64xf32>
    %32 = vector.broadcast %31 : vector<1x64xf32> to vector<96x64xf32>
    %33 = arith.mulf %30, %32 : vector<96x64xf32>
    %c0_11 = arith.constant 0 : index
    %c0_12 = arith.constant 0 : index
    %34 = vector.load %arg7[%c0_11, %c0_12] : memref<64x192xf32, #tpu.memory_space<vmem>>, vector<64x192xf32>
    %cst_13 = arith.constant dense<0.000000e+00> : vector<96x192xf32>
    %35 = tpu.matmul %33, %34, %cst_13 {dimension_numbers = #tpu.dot_dimension_numbers<[1], [0], [0], [1], [0, 0, 1, 1], [], []>} : vector<96x64xf32>, vector<64x192xf32>, vector<96x192xf32> -> vector<96x192xf32>
    %36 = vector.extract_strided_slice %35 {offsets = [0, 0], sizes = [96, 64], strides = [1, 1]} : vector<96x192xf32> to vector<96x64xf32>
    %c0_14 = arith.constant 0 : index
    %c0_15 = arith.constant 0 : index
    %37 = vector.load %arg8[%c0_14, %c0_15] : memref<96x64xf32, #tpu.memory_space<vmem>>, vector<96x64xf32>
    %38 = arith.mulf %36, %37 : vector<96x64xf32>
    %39 = vector.extract_strided_slice %35 {offsets = [0, 64], sizes = [96, 64], strides = [1, 1]} : vector<96x192xf32> to vector<96x64xf32>
    %c0_16 = arith.constant 0 : index
    %c0_17 = arith.constant 0 : index
    %40 = vector.load %arg9[%c0_16, %c0_17] : memref<96x64xf32, #tpu.memory_space<vmem>>, vector<96x64xf32>
    %41 = arith.mulf %39, %40 : vector<96x64xf32>
    %42 = arith.addf %38, %41 : vector<96x64xf32>
    %43 = vector.extract_strided_slice %35 {offsets = [0, 128], sizes = [96, 64], strides = [1, 1]} : vector<96x192xf32> to vector<96x64xf32>
    %c0_18 = arith.constant 0 : index
    %c0_19 = arith.constant 0 : index
    %44 = vector.load %arg2[%c0_18, %c0_19] : memref<8x2xf32, #tpu.memory_space<vmem>>, vector<8x2xf32>
    %45 = vector.extract_strided_slice %44 {offsets = [0, 0], sizes = [8, 1], strides = [1, 1]} : vector<8x2xf32> to vector<8x1xf32>
    %c0_20 = arith.constant 0 : index
    %c0_21 = arith.constant 0 : index
    %46 = vector.load %arg3[%c0_20, %c0_21] : memref<2x64xf32, #tpu.memory_space<vmem>>, vector<1x64xf32>
    %47 = vector.broadcast %45 : vector<8x1xf32> to vector<8x64xf32>
    %48 = vector.broadcast %46 : vector<1x64xf32> to vector<8x64xf32>
    %49 = arith.mulf %47, %48 : vector<8x64xf32>
    %50 = vector.extract_strided_slice %44 {offsets = [0, 1], sizes = [8, 1], strides = [1, 1]} : vector<8x2xf32> to vector<8x1xf32>
    %c1_22 = arith.constant 1 : index
    %c0_23 = arith.constant 0 : index
    %51 = vector.load %arg3[%c1_22, %c0_23] : memref<2x64xf32, #tpu.memory_space<vmem>>, vector<1x64xf32>
    %52 = vector.broadcast %50 : vector<8x1xf32> to vector<8x64xf32>
    %53 = vector.broadcast %51 : vector<1x64xf32> to vector<8x64xf32>
    %54 = arith.mulf %52, %53 : vector<8x64xf32>
    %55 = arith.addf %49, %54 : vector<8x64xf32>
    %c0_24 = arith.constant 0 : index
    %c0_25 = arith.constant 0 : index
    %56 = vector.load %arg4[%c0_24, %c0_25] : memref<1x64xf32, #tpu.memory_space<vmem>>, vector<1x64xf32>
    %57 = vector.broadcast %56 : vector<1x64xf32> to vector<8x64xf32>
    %58 = arith.addf %55, %57 : vector<8x64xf32>
    %59 = arith.negf %58 : vector<8x64xf32>
    %60 = math.exp %59 : vector<8x64xf32>
    %cst_26 = arith.constant 1.000000e+00 : f32
    %61 = vector.broadcast %cst_26 : f32 to vector<8x64xf32>
    %62 = arith.addf %61, %60 : vector<8x64xf32>
    %63 = arith.divf %61, %62 : vector<8x64xf32>
    %64 = arith.mulf %58, %63 : vector<8x64xf32>
    %65 = arith.mulf %64, %64 : vector<8x64xf32>
    %cst_27 = arith.constant dense<0.000000e+00> : vector<8xf32>
    %66 = vector.multi_reduction <add>, %65, %cst_27 [1] : vector<8x64xf32> to vector<8xf32>
    %67 = vector.shape_cast %66 : vector<8xf32> to vector<8x1xf32>
    %cst_28 = arith.constant 6.400000e+01 : f32
    %68 = vector.broadcast %cst_28 : f32 to vector<8x1xf32>
    %69 = arith.divf %67, %68 : vector<8x1xf32>
    %cst_29 = arith.constant 9.99999974E-6 : f32
    %70 = vector.broadcast %cst_29 : f32 to vector<8x1xf32>
    %71 = arith.addf %69, %70 : vector<8x1xf32>
    %72 = math.rsqrt %71 : vector<8x1xf32>
    %73 = vector.broadcast %72 : vector<8x1xf32> to vector<8x64xf32>
    %74 = arith.mulf %64, %73 : vector<8x64xf32>
    %c0_30 = arith.constant 0 : index
    %c0_31 = arith.constant 0 : index
    %75 = vector.load %arg5[%c0_30, %c0_31] : memref<1x64xf32, #tpu.memory_space<vmem>>, vector<1x64xf32>
    %76 = vector.broadcast %75 : vector<1x64xf32> to vector<8x64xf32>
    %77 = arith.mulf %74, %76 : vector<8x64xf32>
    %c0_32 = arith.constant 0 : index
    %c0_33 = arith.constant 0 : index
    %78 = vector.load %arg6[%c0_32, %c0_33] : memref<64x128xf32, #tpu.memory_space<vmem>>, vector<64x128xf32>
    %cst_34 = arith.constant dense<0.000000e+00> : vector<8x128xf32>
    %79 = tpu.matmul %77, %78, %cst_34 {dimension_numbers = #tpu.dot_dimension_numbers<[1], [0], [0], [1], [0, 0, 1, 1], [], []>} : vector<8x64xf32>, vector<64x128xf32>, vector<8x128xf32> -> vector<8x128xf32>
    %c11 = arith.constant 11 : index
    %c0_35 = arith.constant 0 : index
    %80 = vector.load %arg8[%c11, %c0_35] : memref<96x64xf32, #tpu.memory_space<vmem>>, vector<1x64xf32>
    %c11_36 = arith.constant 11 : index
    %c0_37 = arith.constant 0 : index
    %81 = vector.load %arg9[%c11_36, %c0_37] : memref<96x64xf32, #tpu.memory_space<vmem>>, vector<1x64xf32>
    %82 = vector.extract_strided_slice %79 {offsets = [0, 0], sizes = [8, 64], strides = [1, 1]} : vector<8x128xf32> to vector<8x64xf32>
    %83 = vector.broadcast %80 : vector<1x64xf32> to vector<8x64xf32>
    %84 = arith.mulf %82, %83 : vector<8x64xf32>
    %85 = vector.extract_strided_slice %79 {offsets = [0, 64], sizes = [8, 64], strides = [1, 1]} : vector<8x128xf32> to vector<8x64xf32>
    %86 = vector.broadcast %81 : vector<1x64xf32> to vector<8x64xf32>
    %87 = arith.mulf %85, %86 : vector<8x64xf32>
    %88 = arith.addf %84, %87 : vector<8x64xf32>
    %cst_38 = arith.constant 0.353553385 : f32
    %89 = vector.broadcast %cst_38 : f32 to vector<8x64xf32>
    %90 = arith.mulf %88, %89 : vector<8x64xf32>
    %c0_39 = arith.constant 0 : index
    %c0_40 = arith.constant 0 : index
    %91 = vector.load %arg11[%c0_39, %c0_40] : memref<96x8xf32, #tpu.memory_space<vmem>>, vector<96x8xf32>
    %cst_41 = arith.constant dense<0.000000e+00> : vector<96x64xf32>
    %92 = tpu.matmul %91, %90, %cst_41 {dimension_numbers = #tpu.dot_dimension_numbers<[1], [0], [0], [1], [0, 0, 1, 1], [], []>} : vector<96x8xf32>, vector<8x64xf32>, vector<96x64xf32> -> vector<96x64xf32>
    %93 = arith.mulf %42, %92 : vector<96x64xf32>
    %c0_42 = arith.constant 0 : index
    %c0_43 = arith.constant 0 : index
    %94 = vector.load %arg10[%c0_42, %c0_43] : memref<64x64xf32, #tpu.memory_space<vmem>>, vector<64x64xf32>
    %cst_44 = arith.constant dense<0.000000e+00> : vector<96x64xf32>
    %95 = tpu.matmul %93, %94, %cst_44 {dimension_numbers = #tpu.dot_dimension_numbers<[1], [0], [0], [1], [0, 0, 1, 1], [], []>} : vector<96x64xf32>, vector<64x64xf32>, vector<96x64xf32> -> vector<96x64xf32>
    %cst_45 = arith.constant dense<0xFF800000> : vector<64xf32>
    %96 = vector.multi_reduction <maximumf>, %95, %cst_45 [0] : vector<96x64xf32> to vector<64xf32>
    %97 = vector.shape_cast %96 : vector<64xf32> to vector<1x64xf32>
    %98 = vector.broadcast %97 : vector<1x64xf32> to vector<96x64xf32>
    %99 = arith.subf %95, %98 : vector<96x64xf32>
    %100 = math.exp %99 : vector<96x64xf32>
    %101 = arith.mulf %100, %43 : vector<96x64xf32>
    %102 = tpu.concatenate %100, %101 in 1 : vector<96x64xf32>, vector<96x64xf32> -> vector<96x128xf32>
    %c0_46 = arith.constant 0 : index
    %c0_47 = arith.constant 0 : index
    %103 = vector.load %arg12[%c0_46, %c0_47] : memref<8x96xf32, #tpu.memory_space<vmem>>, vector<8x96xf32>
    %cst_48 = arith.constant dense<0.000000e+00> : vector<8x128xf32>
    %104 = tpu.matmul %103, %102, %cst_48 {dimension_numbers = #tpu.dot_dimension_numbers<[1], [0], [0], [1], [0, 0, 1, 1], [], []>} : vector<8x96xf32>, vector<96x128xf32>, vector<8x128xf32> -> vector<8x128xf32>
    %105 = vector.extract_strided_slice %104 {offsets = [0, 0], sizes = [8, 64], strides = [1, 1]} : vector<8x128xf32> to vector<8x64xf32>
    %cst_49 = arith.constant 1.000000e-30 : f32
    %106 = vector.broadcast %cst_49 : f32 to vector<8x64xf32>
    %107 = arith.maximumf %105, %106 : vector<8x64xf32>
    %108 = vector.extract_strided_slice %104 {offsets = [0, 64], sizes = [8, 64], strides = [1, 1]} : vector<8x128xf32> to vector<8x64xf32>
    %109 = arith.divf %108, %107 : vector<8x64xf32>
    %c0_50 = arith.constant 0 : index
    %c0_51 = arith.constant 0 : index
    %110 = vector.load %arg13[%c0_50, %c0_51] : memref<64x64xf32, #tpu.memory_space<vmem>>, vector<64x64xf32>
    %cst_52 = arith.constant dense<0.000000e+00> : vector<8x64xf32>
    %111 = tpu.matmul %109, %110, %cst_52 {dimension_numbers = #tpu.dot_dimension_numbers<[1], [0], [0], [1], [0, 0, 1, 1], [], []>} : vector<8x64xf32>, vector<64x64xf32>, vector<8x64xf32> -> vector<8x64xf32>
    %112 = arith.addf %64, %111 : vector<8x64xf32>
    %113 = arith.mulf %112, %112 : vector<8x64xf32>
    %cst_53 = arith.constant dense<0.000000e+00> : vector<8xf32>
    %114 = vector.multi_reduction <add>, %113, %cst_53 [1] : vector<8x64xf32> to vector<8xf32>
    %115 = vector.shape_cast %114 : vector<8xf32> to vector<8x1xf32>
    %cst_54 = arith.constant 6.400000e+01 : f32
    %116 = vector.broadcast %cst_54 : f32 to vector<8x1xf32>
    %117 = arith.divf %115, %116 : vector<8x1xf32>
    %cst_55 = arith.constant 9.99999974E-6 : f32
    %118 = vector.broadcast %cst_55 : f32 to vector<8x1xf32>
    %119 = arith.addf %117, %118 : vector<8x1xf32>
    %120 = math.rsqrt %119 : vector<8x1xf32>
    %121 = vector.broadcast %120 : vector<8x1xf32> to vector<8x64xf32>
    %122 = arith.mulf %112, %121 : vector<8x64xf32>
    %c0_56 = arith.constant 0 : index
    %c0_57 = arith.constant 0 : index
    %123 = vector.load %arg14[%c0_56, %c0_57] : memref<1x64xf32, #tpu.memory_space<vmem>>, vector<1x64xf32>
    %124 = vector.broadcast %123 : vector<1x64xf32> to vector<8x64xf32>
    %125 = arith.mulf %122, %124 : vector<8x64xf32>
    %c0_58 = arith.constant 0 : index
    %c0_59 = arith.constant 0 : index
    %126 = vector.load %arg15[%c0_58, %c0_59] : memref<64x512xf32, #tpu.memory_space<vmem>>, vector<64x512xf32>
    %cst_60 = arith.constant dense<0.000000e+00> : vector<8x512xf32>
    %127 = tpu.matmul %125, %126, %cst_60 {dimension_numbers = #tpu.dot_dimension_numbers<[1], [0], [0], [1], [0, 0, 1, 1], [], []>} : vector<8x64xf32>, vector<64x512xf32>, vector<8x512xf32> -> vector<8x512xf32>
    %128 = vector.extract_strided_slice %127 {offsets = [0, 0], sizes = [8, 256], strides = [1, 1]} : vector<8x512xf32> to vector<8x256xf32>
    %129 = vector.extract_strided_slice %127 {offsets = [0, 256], sizes = [8, 256], strides = [1, 1]} : vector<8x512xf32> to vector<8x256xf32>
    %130 = arith.negf %128 : vector<8x256xf32>
    %131 = math.exp %130 : vector<8x256xf32>
    %cst_61 = arith.constant 1.000000e+00 : f32
    %132 = vector.broadcast %cst_61 : f32 to vector<8x256xf32>
    %133 = arith.addf %132, %131 : vector<8x256xf32>
    %134 = arith.divf %132, %133 : vector<8x256xf32>
    %135 = arith.mulf %128, %134 : vector<8x256xf32>
    %136 = arith.mulf %135, %129 : vector<8x256xf32>
    %c0_62 = arith.constant 0 : index
    %c0_63 = arith.constant 0 : index
    %137 = vector.load %arg16[%c0_62, %c0_63] : memref<256x64xf32, #tpu.memory_space<vmem>>, vector<256x64xf32>
    %cst_64 = arith.constant dense<0.000000e+00> : vector<8x64xf32>
    %138 = tpu.matmul %136, %137, %cst_64 {dimension_numbers = #tpu.dot_dimension_numbers<[1], [0], [0], [1], [0, 0, 1, 1], [], []>} : vector<8x256xf32>, vector<256x64xf32>, vector<8x64xf32> -> vector<8x64xf32>
    %139 = arith.addf %112, %138 : vector<8x64xf32>
    %140 = arith.mulf %139, %139 : vector<8x64xf32>
    %cst_65 = arith.constant dense<0.000000e+00> : vector<8xf32>
    %141 = vector.multi_reduction <add>, %140, %cst_65 [1] : vector<8x64xf32> to vector<8xf32>
    %142 = vector.shape_cast %141 : vector<8xf32> to vector<8x1xf32>
    %cst_66 = arith.constant 6.400000e+01 : f32
    %143 = vector.broadcast %cst_66 : f32 to vector<8x1xf32>
    %144 = arith.divf %142, %143 : vector<8x1xf32>
    %cst_67 = arith.constant 9.99999974E-6 : f32
    %145 = vector.broadcast %cst_67 : f32 to vector<8x1xf32>
    %146 = arith.addf %144, %145 : vector<8x1xf32>
    %147 = math.rsqrt %146 : vector<8x1xf32>
    %148 = vector.broadcast %147 : vector<8x1xf32> to vector<8x64xf32>
    %149 = arith.mulf %139, %148 : vector<8x64xf32>
    %c0_68 = arith.constant 0 : index
    %c0_69 = arith.constant 0 : index
    %150 = vector.load %arg17[%c0_68, %c0_69] : memref<1x64xf32, #tpu.memory_space<vmem>>, vector<1x64xf32>
    %151 = vector.broadcast %150 : vector<1x64xf32> to vector<8x64xf32>
    %152 = arith.mulf %149, %151 : vector<8x64xf32>
    %c0_70 = arith.constant 0 : index
    %c0_71 = arith.constant 0 : index
    %153 = vector.load %arg18[%c0_70, %c0_71] : memref<1x64xf32, #tpu.memory_space<vmem>>, vector<1x64xf32>
    %154 = vector.broadcast %153 : vector<1x64xf32> to vector<8x64xf32>
    %155 = arith.mulf %152, %154 : vector<8x64xf32>
    %cst_72 = arith.constant dense<0.000000e+00> : vector<8xf32>
    %156 = vector.multi_reduction <add>, %155, %cst_72 [1] : vector<8x64xf32> to vector<8xf32>
    %157 = vector.shape_cast %156 : vector<8xf32> to vector<8x1xf32>
    %c0_73 = arith.constant 0 : index
    %c0_74 = arith.constant 0 : index
    %158 = vector.load %arg19[%c0_73, %c0_74] : memref<8x1xf32, #tpu.memory_space<vmem>>, vector<8x1xf32>
    tpu.vector_store %arg19[%c0_73, %c0_74], %157 {strides = array<i32>} : memref<8x1xf32, #tpu.memory_space<vmem>>, vector<8x1xf32>,
    return
  }
  func.func @transform_0(%arg0: i32) -> (i32, i32) {
    %c0_i32 = arith.constant 0 : i32
    %c0_i32_0 = arith.constant 0 : i32
    return %arg0, %c0_i32 : i32, i32
  }
  func.func @transform_1(%arg0: i32) -> (i32, i32) {
    %c0_i32 = arith.constant 0 : i32
    %c0_i32_0 = arith.constant 0 : i32
    return %arg0, %c0_i32 : i32, i32
  }
  func.func @transform_2(%arg0: i32) -> (i32, i32) {
    %c0_i32 = arith.constant 0 : i32
    %c0_i32_0 = arith.constant 0 : i32
    %c0_i32_1 = arith.constant 0 : i32
    return %c0_i32, %c0_i32_0 : i32, i32
  }
  func.func @transform_3(%arg0: i32) -> (i32, i32) {
    %c0_i32 = arith.constant 0 : i32
    %c0_i32_0 = arith.constant 0 : i32
    %c0_i32_1 = arith.constant 0 : i32
    return %c0_i32, %c0_i32_0 : i32, i32
  }
  func.func @transform_4(%arg0: i32) -> (i32, i32) {
    %c0_i32 = arith.constant 0 : i32
    %c0_i32_0 = arith.constant 0 : i32
    %c0_i32_1 = arith.constant 0 : i32
    return %c0_i32, %c0_i32_0 : i32, i32
  }
  func.func @transform_5(%arg0: i32) -> (i32, i32) {
    %c0_i32 = arith.constant 0 : i32
    %c0_i32_0 = arith.constant 0 : i32
    %c0_i32_1 = arith.constant 0 : i32
    return %c0_i32, %c0_i32_0 : i32, i32
  }
  func.func @transform_6(%arg0: i32) -> (i32, i32) {
    %c0_i32 = arith.constant 0 : i32
    %c0_i32_0 = arith.constant 0 : i32
    %c0_i32_1 = arith.constant 0 : i32
    return %c0_i32, %c0_i32_0 : i32, i32
  }
  func.func @transform_7(%arg0: i32) -> (i32, i32) {
    %c0_i32 = arith.constant 0 : i32
    %c0_i32_0 = arith.constant 0 : i32
    %c0_i32_1 = arith.constant 0 : i32
    return %c0_i32, %c0_i32_0 : i32, i32
  }
  func.func @transform_8(%arg0: i32) -> (i32, i32) {
    %c0_i32 = arith.constant 0 : i32
    %c0_i32_0 = arith.constant 0 : i32
    %c0_i32_1 = arith.constant 0 : i32
    return %c0_i32, %c0_i32_0 : i32, i32
  }
  func.func @transform_9(%arg0: i32) -> (i32, i32) {
    %c0_i32 = arith.constant 0 : i32
    %c0_i32_0 = arith.constant 0 : i32
    %c0_i32_1 = arith.constant 0 : i32
    return %c0_i32, %c0_i32_0 : i32, i32
  }
  func.func @transform_10(%arg0: i32) -> (i32, i32) {
    %c0_i32 = arith.constant 0 : i32
    %c0_i32_0 = arith.constant 0 : i32
    %c0_i32_1 = arith.constant 0 : i32
    return %c0_i32, %c0_i32_0 : i32, i32
  }
  func.func @transform_11(%arg0: i32) -> (i32, i32) {
    %c0_i32 = arith.constant 0 : i32
    %c0_i32_0 = arith.constant 0 : i32
    %c0_i32_1 = arith.constant 0 : i32
    return %c0_i32, %c0_i32_0 : i32, i32
  }
  func.func @transform_12(%arg0: i32) -> (i32, i32) {
    %c0_i32 = arith.constant 0 : i32
    %c0_i32_0 = arith.constant 0 : i32
    %c0_i32_1 = arith.constant 0 : i32
    return %c0_i32, %c0_i32_0 : i32, i32
  }
  func.func @transform_13(%arg0: i32) -> (i32, i32) {
    %c0_i32 = arith.constant 0 : i32
    %c0_i32_0 = arith.constant 0 : i32
    %c0_i32_1 = arith.constant 0 : i32
    return %c0_i32, %c0_i32_0 : i32, i32
  }
  func.func @transform_14(%arg0: i32) -> (i32, i32) {
    %c0_i32 = arith.constant 0 : i32
    %c0_i32_0 = arith.constant 0 : i32
    %c0_i32_1 = arith.constant 0 : i32
    return %c0_i32, %c0_i32_0 : i32, i32
  }
  func.func @transform_15(%arg0: i32) -> (i32, i32) {
    %c0_i32 = arith.constant 0 : i32
    %c0_i32_0 = arith.constant 0 : i32
    %c0_i32_1 = arith.constant 0 : i32
    return %c0_i32, %c0_i32_0 : i32, i32
  }
  func.func @transform_16(%arg0: i32) -> (i32, i32) {
    %c0_i32 = arith.constant 0 : i32
    %c0_i32_0 = arith.constant 0 : i32
    %c0_i32_1 = arith.constant 0 : i32
    return %c0_i32, %c0_i32_0 : i32, i32
  }
  func.func @transform_17(%arg0: i32) -> (i32, i32) {
    %c0_i32 = arith.constant 0 : i32
    %c0_i32_0 = arith.constant 0 : i32
    %c0_i32_1 = arith.constant 0 : i32
    return %c0_i32, %c0_i32_0 : i32, i32
  }
  func.func @transform_18(%arg0: i32) -> (i32, i32) {
    %c0_i32 = arith.constant 0 : i32
    %c0_i32_0 = arith.constant 0 : i32
    return %arg0, %c0_i32 : i32, i32
  }
}

</mosaic_0001>

<bundles_post_ra>
// kernel: tpu_custom_call.1
= control target key start
LH: loop header
LB: loop body
LE: loop exit
PB: predicated region body
PF: predicated region fallthrough
CT: control target
= control target key end

     0   :  { %s2803_s27 = smov 0   ;;  %s3874_s0 = inlined_call_operand.vmem [shape: f32[192,2], index: 0, kind: input, shape index: {}]   ;;  %s3875_s1 = inlined_call_operand.vmem [shape: f32[16,2], index: 1, kind: input, shape index: {}]   ;;  %s3876_s2 = inlined_call_operand.vmem [shape: f32[2,64], index: 2, kind: input, shape index: {}]   ;;  %s3877_s3 = inlined_call_operand.vmem [shape: f32[1,64], index: 3, kind: input, shape index: {}]   ;;  %s3878_s4 = inlined_call_operand.vmem [shape: f32[1,64], index: 4, kind: input, shape index: {}]   ;;  %s3879_s5 = inlined_call_operand.vmem [shape: f32[64,128], index: 5, kind: input, shape index: {}]   ;;  %s3880_s6 = inlined_call_operand.vmem [shape: f32[64,192], index: 6, kind: input, shape index: {}]   ;;  %s3881_s7 = inlined_call_operand.vmem [shape: f32[96,64], index: 7, kind: input, shape index: {}]   ;;  %s3882_s8 = inlined_call_operand.vmem [shape: f32[96,64], index: 8, kind: input, shape index: {}]   ;;  %s3883_s9 = inlined_call_operand.vmem [shape: f32[64,64], index: 9, kind: input, shape index: {}]   ;;  %s3884_s10 = inlined_call_operand.vmem [shape: f32[96,8], index: 10, kind: input, shape index: {}]   ;;  %s3885_s11 = inlined_call_operand.vmem [shape: f32[8,96], index: 11, kind: input, shape index: {}]   ;;  %s3886_s12 = inlined_call_operand.vmem [shape: f32[64,64], index: 12, kind: input, shape index: {}]   ;;  %s3887_s13 = inlined_call_operand.vmem [shape: f32[1,64], index: 13, kind: input, shape index: {}]   ;;  %s3888_s14 = inlined_call_operand.vmem [shape: f32[64,512], index: 14, kind: input, shape index: {}]   ;;  %s3889_s15 = inlined_call_operand.vmem [shape: f32[256,64], index: 15, kind: input, shape index: {}]   ;;  %s3890_s16 = inlined_call_operand.vmem [shape: f32[1,64], index: 16, kind: input, shape index: {}]   ;;  %s3891_s17 = inlined_call_operand.vmem [shape: f32[1,64], index: 17, kind: input, shape index: {}]   ;;  %s3892_s18 = inlined_call_operand.vmem [shape: f32[16,1], index: 18, kind: output, shape index: {}]  }
   0x1   :  { %3894 = sst [smem:[#allocation2_spill]] %s3874_s0 }
   0x2   :  { %3895 = sst [smem:[#allocation3_spill]] %s3875_s1 }
   0x3   :  { %3896 = sst [smem:[#allocation4_spill]] %s3876_s2 }
   0x4 LB: > { %s2426_s28 = sadd.s32 4294967295, %s2702_s27   ;;  %p2430_p0 = scmp.ge.s32.totalorder %s2702_s27, 1  ;;  %s2702_s27 = sphi %s2803_s27, %s28_s27  }
   0x5   : > { %p522_p1 = scmp.lt.s32.totalorder %s2702_s27, 3 }
   0x7   : > { %p523_p2 = pnand %p2430_p0, %p522_p1 }
   0x8   : > { %p585_p3 = scmp.lt.s32.totalorder (!%p523_p2), %s2426_s28, 1  ;;  %s579_s29 = smul.u32 (!%p523_p2), 12, %s2426_s28 }
   0x9   : > { %526 = sbr.rel (%p523_p2) target bundleno = 2432 (0x980), region = 92  ;;  %s3897_s1 = sld [smem:[#allocation3_spill]] (!%p523_p2) }
   0xa   : > { %p580_p4 = scmp.lt.s32.totalorder (!%p523_p2), %s579_s29, 23  ;;  %s3898_s23 = sld [smem:[#allocation2_spill]] (!%p523_p2) }
   0xe   : > { %v2704_v0 = vmov 0   ;;  %v2705_v1 = vmov 1   ;;  %s3911_s28 = smov (!%p585_p3, %s2426_s28), 1  ;;  %s3913_s29 = smov (!%p580_p4, %s579_s29), 23  ;;  %v2887_v23 = vld [vmem:[%s3877_s3] ss:$0 sm:$0xff] }
   0xf   : > { %2518 = vset.pattern.permute.xlu0 %v2704_v0  ;;  %2521 = vset.pattern.permute.xlu2 %v2705_v1  ;;  %s2432_s30 = sshll.u32 %s3911_s28, 3  ;;  %s2431_s21 = sshll.u32 %s3913_s29, 3  ;;  %vm1021_vm4 = vcmask 523264  }
  0x10   : > { %2520 = vset.pattern.permute.xlu1 %v2704_v0  ;;  %s588_s20 = scalar_lea.vmem %s3897_s1, %s2432_s30  ;;  %s2825_s24 = scalar_lea.vmem %s3898_s23, %s2431_s21 }
  0x11   : > { %v1551_v2 = vld [vmem:[%s588_s20] sm:$0xff]  ;;  %v594_v4 = vld [vmem:[%s2825_s24 + $0x8] sm:$0xff]  ;;  %v595_v5 = vld [vmem:[%s2825_s24 + $0x10] sm:$0xff]  ;;  %s3899_s29 = sld [smem:[#allocation4_spill]]  ;;  %s2707_s1 = smov 64  }
  0x12   : > { %1554 = vperm.xlu0 %2518, %v1551_v2   ;;  %v2828_v3 = vld [vmem:[%s2825_s24] sm:$0xff]  ;;  %v2839_v6 = vld [vmem:[%s2825_s24 + $0x28] sm:$0xff]  ;;  %v2843_v7 = vld [vmem:[%s2825_s24 + $0x18] sm:$0xff] }
  0x13   : > { %681 = vperm.xlu2 %2521, %v2828_v3   ;;  %v597_v8 = vld [vmem:[%s2825_s24 + $0x20] sm:$0xff]  ;;  %v2852_v10 = vld [vmem:[%s2825_s24 + $0x30] sm:$0xff]  ;;  %v2857_v11 = vld [vmem:[%s2825_s24 + $0x38] sm:$0xff] }
  0x14   : > { %v601_v9 = vld [vmem:[%s2825_s24 + $0x40] sm:$0xff]  ;;  %v2862_v12 = vld [vmem:[%s2825_s24 + $0x48] sm:$0xff]  ;;  %v603_v13 = vld [vmem:[%s2825_s24 + $0x50] sm:$0xff] }
  0x15   : > { %v604_v15 = vld [vmem:[%s2825_s24 + $0x58] sm:$0xff]  ;;  %s592_s24 = scalar_lea.vmem %s3892_s18, %s2432_s30 }
  0x17   : > { %v2875_v17 = vld [vmem:[%s3899_s29] ss:$0 sm:$0xff]  ;;  %v2880_v18 = vld [vmem:[%s3899_s29 + $0x1] ss:$0 sm:$0xff] }
  0x1a   : > { %2519 = vset.pattern.permute.xlu0 %v2705_v1 }
  0x1b   : > { %1559 = vperm.xlu0 %2519, %v1551_v2   ;;  %2522 = vset.pattern.permute.xlu2 %v2704_v0 }
  0x1c   : > { %613 = vperm.xlu2 %2522, %v594_v4  }
  0x23   : > { %2524 = vset.pattern.permute.xlu0 %v2704_v0 }
  0x24   : > { %618 = vperm.xlu0 %2524, %v595_v5   ;;  %2523 = vset.pattern.permute.xlu2 %v2705_v1 }
  0x25   : > { %685 = vperm.xlu2 %2523, %v594_v4  }
  0x2c   : > { %2529 = vset.pattern.permute.xlu0 %v2705_v1 }
  0x2d   : > { %689 = vperm.xlu2 %2523, %v595_v5   ;;  %701 = vperm.xlu0 %2529, %v2839_v6  }
  0x35   : > { %2525 = vset.pattern.permute.xlu2 %v2704_v0  ;;  %2530 = vset.pattern.permute.xlu0 %v2704_v0 }
  0x36   : > { %623 = vperm.xlu2 %2525, %v2843_v7   ;;  %628 = vperm.xlu0 %2530, %v597_v8  }
  0x3e   : > { %2527 = vset.pattern.permute.xlu2 %v2705_v1  ;;  %648 = vperm.xlu0 %2530, %v601_v9  }
  0x3f   : > { %697 = vperm.xlu2 %2527, %v597_v8  }
  0x46   : > { %658 = vperm.xlu0 %2530, %v603_v13  }
  0x47   : > { %2531 = vset.pattern.permute.xlu2 %v2704_v0 }
  0x48   : > { %638 = vperm.xlu2 %2531, %v2852_v10  }
  0x4e   : > { %2567 = vset.pattern.permute.xlu0 %v2705_v1 }
  0x50   : > { %643 = vperm.xlu2 %2531, %v2857_v11  }
  0x58   : > { %2533 = vset.pattern.permute.xlu2 %v2705_v1 }
  0x59   : > { %713 = vperm.xlu2 %2533, %v601_v9  }
  0x61   : > { %717 = vperm.xlu2 %2533, %v2862_v12  }
  0x69   : > { %721 = vperm.xlu2 %2533, %v603_v13  }
  0x6d   : > { %v2866_v14 = vpop.permute.xlu2 %681 }
  0x71   : > { %2535 = vset.pattern.permute.xlu2 %v2704_v0 }
  0x72   : > { %663 = vperm.xlu2 %2535, %v604_v15  }
  0x76   : > { %v614_v16 = vpop.permute.xlu2 %613 }
  0x77   : > { %v668_v19 = vmul.f32 %v2875_v17, %v614_v16 }
  0x7a   : > { %2536 = vset.pattern.permute.xlu2 %v2705_v1 }
  0x7b   : > { %725 = vperm.xlu2 %2536, %v604_v15  }
  0x7f   : > { %v686_v20 = vpop.permute.xlu2 %685 }
  0x80   : > { %v730_v21 = vmul.f32 %v2880_v18, %v686_v20 }
  0x82   : > { %v742_v24 = vadd.f32 %v730_v21, %v668_v19 }
  0x84   : > { %v1555_v22 = vpop.permute.xlu0 %1554  ;;  %v758_v25 = vadd.f32 %v2887_v23, %v742_v24 }
  0x85   : > { %v1557_v28 = vmul.f32 %v2875_v17, %v1555_v22 }
  0x86   : > { %v2435_v26 = vmul.f32 -1.442695, %v758_v25 }
  0x87   : > { %v690_v34 = vpop.permute.xlu2 %689 }
  0x88   : > { %2577 = vpow2.f32 %v2435_v26  ;;  %v731_v36 = vmul.f32 %v2880_v18, %v690_v34  ;;  %v1606_v34 = vld [vmem:[%s3879_s5 + $0x18] sm:$0xff] }
  0x8d   : > { %v1560_v27 = vpop.permute.xlu0 %1559 }
  0x8e   : > { %v1562_v29 = vmul.f32 %v2880_v18, %v1560_v27  ;;  %v2578_v31 = vpop.eup %2577 }
  0x8f   : > { %v806_v33 = vadd.f32 1.0, %v2578_v31 }
  0x90   : > { %v1563_v30 = vadd.f32 %v1562_v29, %v1557_v28 }
  0x91   : > { %2579 = vrcp.f32 %v806_v33  ;;  %v843_v47 = vand.u32 2147483648, %v806_v33  ;;  %vm837_vm0 = vweird.f32 %v806_v33  ;;  %v841_v48 = vand.u32 2147483647, %v806_v33 }
  0x92   : > { %v1564_v32 = vadd.f32 %v2887_v23, %v1563_v30 }
  0x93   : > { %v844_v50 = vor.u32 1.1754944e-38, %v843_v47  ;;  %vm842_vm3 = vcmp.eq.f32.partialorder %v841_v48, 8.507059e+37 }
  0x94   : > { %v2470_v35 = vmul.f32 -1.442695, %v1564_v32 }
  0x96   : > { %2581 = vpow2.f32 %v2470_v35  ;;  %v619_v37 = vpop.permute.xlu0 %618  ;;  %v1605_v35 = vld [vmem:[%s3879_s5 + $0x10] sm:$0xff] }
  0x97   : > { %v669_v38 = vmul.f32 %v2875_v17, %v619_v37  ;;  %v2580_v40 = vpop.eup %2579  ;;  %v1604_v37 = vld [vmem:[%s3879_s5 + $0x8] sm:$0xff] }
  0x98   : > { %v833_v42 = vmul.f32 %v2580_v40, %v806_v33  ;;  %vm838_vm1 = vweird.f32 %v2580_v40  ;;  %v2706_v33 = vmov 64.0  }
  0x99   : > { %v743_v39 = vadd.f32 %v731_v36, %v669_v38  ;;  %vm839_vm2 = vmor %vm837_vm0, %vm838_vm1  ;;  %v1603_v38 = vld [vmem:[%s3879_s5] sm:$0xff] }
  0x9a   : > { %v834_v46 = vsub.f32 1.0, %v833_v42 }
  0x9b   : > { %v759_v41 = vadd.f32 %v2887_v23, %v743_v39 }
  0x9c   : > { %v2582_v43 = vpop.eup %2581  ;;  %v835_v49 = vmul.f32 %v2580_v40, %v834_v46 }
  0x9d   : > { %v1568_v44 = vadd.f32 1.0, %v2582_v43  ;;  %v2436_v45 = vmul.f32 -1.442695, %v759_v41 }
  0x9e   : > { %v836_v51 = vadd.f32 %v2580_v40, %v835_v49 }
  0x9f   : > { %2583 = vrcp.f32 %v1568_v44  ;;  %v1580_v61 = vand.u32 2147483648, %v1568_v44  ;;  %v1578_v63 = vand.u32 2147483647, %v1568_v44  ;;  %vm1574_vm6 = vweird.f32 %v1568_v44 }
  0xa0   : > { %2585 = vpow2.f32 %v2436_v45  ;;  %v840_v52 = vsel %vm839_vm2, %v2580_v40, %v836_v51 }
  0xa1   : > { %v845_v54 = vsel %vm842_vm3, %v844_v50, %v840_v52  ;;  %v1581_v5 = vor.u32 1.1754944e-38, %v1580_v61  ;;  %vm1579_vm8 = vcmp.eq.f32.partialorder %v1578_v63, 8.507059e+37  ;;  %v2961_v61 = vld [vmem:[%s3878_s4] ss:$0 sm:$0xff] }
  0xa2   : > { %v2896_v57 = vmul.f32 %v845_v54, %v758_v25 }
  0xa4   : > { %v1010_v60 = vmul.f32 %v2896_v57, %v2896_v57 }
  0xa5   : > { %v2584_v53 = vpop.eup %2583 }
  0xa6   : > { %v2586_v55 = vpop.eup %2585  ;;  %v1570_v56 = vmul.f32 %v2584_v53, %v1568_v44  ;;  %vm1575_vm5 = vweird.f32 %v2584_v53  ;;  %v1025_v2 = vsel %vm1021_vm4, %v1010_v60, 0.0 }
  0xa7   : > { %v807_v58 = vadd.f32 1.0, %v2586_v55  ;;  %1026 = vadd.xlane.f32.xlu0 %v1025_v2  ;;  %vm1576_vm7 = vmor %vm1574_vm6, %vm1575_vm5 }
  0xa8   : > { %v1571_v59 = vsub.f32 1.0, %v1570_v56 }
  0xa9   : > { %2587 = vrcp.f32 %v807_v58  ;;  %vm852_vm9 = vweird.f32 %v807_v58  ;;  %v858_v19 = vand.u32 2147483648, %v807_v58  ;;  %v856_v22 = vand.u32 2147483647, %v807_v58 }
  0xaa   : > { %v1572_v62 = vmul.f32 %v2584_v53, %v1571_v59  ;;  %2589 = vrcp.f32 %v2706_v33 }
  0xab   : > { %v859_v26 = vor.u32 1.1754944e-38, %v858_v19  ;;  %vm857_vm12 = vcmp.eq.f32.partialorder %v856_v22, 8.507059e+37 }
  0xac   : > { %v1573_v4 = vadd.f32 %v2584_v53, %v1572_v62 }
  0xae   : > { %v1577_v8 = vsel %vm1576_vm7, %v2584_v53, %v1573_v4  ;;  %v729_v4 = vmul.f32 %v2880_v18, %v2866_v14 }
  0xaf   : > { %v2588_v9 = vpop.eup %2587  ;;  %v1582_v13 = vsel %vm1579_vm8, %v1581_v5, %v1577_v8 }
  0xb0   : > { %v2901_v15 = vmul.f32 %v1582_v13, %v1564_v32  ;;  %v848_v16 = vmul.f32 %v2588_v9, %v807_v58  ;;  %vm853_vm10 = vweird.f32 %v2588_v9 }
  0xb1   : > { %vm854_vm11 = vmor %vm852_vm9, %vm853_vm10 }
  0xb2   : > { %v1585_v20 = vmul.f32 %v2901_v15, %v2901_v15  ;;  %v849_v21 = vsub.f32 1.0, %v848_v16 }
  0xb4   : > { %v1586_v24 = vsel %vm1021_vm4, %v1585_v20, 0.0  ;;  %v850_v25 = vmul.f32 %v2588_v9, %v849_v21 }
  0xb5   : > { %1587 = vadd.xlane.f32.xlu1 %v1586_v24 }
  0xb6   : > { %v851_v27 = vadd.f32 %v2588_v9, %v850_v25 }
  0xb8   : > { %v855_v28 = vsel %vm854_vm11, %v2588_v9, %v851_v27 }
  0xb9   : > { %v860_v29 = vsel %vm857_vm12, %v859_v26, %v855_v28 }
  0xba   : > { %v2906_v30 = vmul.f32 %v860_v29, %v759_v41  ;;  %v2945_v41 = vpop.permute.xlu0 %701 }
  0xbc   : > { %v1011_v31 = vmul.f32 %v2906_v30, %v2906_v30 }
  0xbe   : > { %v1028_v32 = vsel %vm1021_vm4, %v1011_v31, 0.0 }
  0xbf   : > { %1029 = vadd.xlane.f32.xlu2 %v1028_v32 }
  0xc2   : > { %v629_v47 = vpop.permute.xlu0 %628 }
  0xc3   : > { %v671_v49 = vmul.f32 %v2875_v17, %v629_v47 }
  0xca   : > { %v649_v20 = vpop.permute.xlu0 %648 }
  0xcb   : > { %v675_v22 = vmul.f32 %v2875_v17, %v649_v20 }
  0xce   : > { %608 = vperm.xlu1 %2520, %v2828_v3   ;;  %v2590_v3 = vpop.eup %2589 }
  0xcf   : > { %vm1063_vm13 = vweird.f32 %v2590_v3 }
  0xd6   : > { %2526 = vset.pattern.permute.xlu1 %v2705_v1 }
  0xd7   : > { %693 = vperm.xlu1 %2526, %v2843_v7   ;;  %v1610_v7 = vld [vmem:[%s3879_s5 + $0x38] sm:$0xff] }
  0xd8   : > { %1622 = vmatpush.msra.mxu2 %v1610_v7 }
  0xdf   : > { %2528 = vset.pattern.permute.xlu1 %v2704_v0 }
  0xe0   : > { %633 = vperm.xlu1 %2528, %v2839_v6   ;;  %v1059_v6 = vmul.f32 64.0, %v2590_v3 }
  0xe8   : > { %2532 = vset.pattern.permute.xlu1 %v2705_v1  ;;  %v1609_v1 = vld [vmem:[%s3879_s5 + $0x30] sm:$0xff] }
  0xe9   : > { %705 = vperm.xlu1 %2532, %v2852_v10   ;;  %1623 = vmatpush.msra.mxu2 %v1609_v1  ;;  %v1607_v10 = vld [vmem:[%s3879_s5 + $0x20] sm:$0xff] }
  0xf1   : > { %709 = vperm.xlu1 %2532, %v2857_v11   ;;  %v1060_v11 = vsub.f32 1.0, %v1059_v6 }
  0xf3   : > { %v1061_v36 = vmul.f32 %v2590_v3, %v1060_v11 }
  0xf5   : > { %v1062_v39 = vadd.f32 %v2590_v3, %v1061_v36 }
  0xf7   : > { %v2947_v42 = vsel %vm1063_vm13, %v2590_v3, %v1062_v39 }
  0xf9   : > { %2534 = vset.pattern.permute.xlu1 %v2704_v0  ;;  %v1608_v0 = vld [vmem:[%s3879_s5 + $0x28] sm:$0xff] }
  0xfa   : > { %653 = vperm.xlu1 %2534, %v2862_v12   ;;  %1624 = vmatpush.msra.mxu2 %v1608_v0  ;;  %v624_v12 = vpop.permute.xlu2 %623 }
  0xfb   : > { %v670_v14 = vmul.f32 %v2875_v17, %v624_v12 }
  0xfc   : > { %1625 = vmatpush.msra.mxu2 %v1607_v10 }
  0xfe   : > { %1626 = vmatpush.msra.mxu2 %v1606_v34  ;;  %v659_v34 = vpop.permute.xlu0 %658 }
 0x100   : > { %1627 = vmatpush.msra.mxu2 %v1605_v35 }
 0x102   : > { %1628 = vmatpush.msra.mxu2 %v1604_v37  ;;  %v698_v40 = vpop.permute.xlu2 %697  ;;  %v677_v37 = vmul.f32 %v2875_v17, %v659_v34 }
 0x103   : > { %v733_v48 = vmul.f32 %v2880_v18, %v698_v40 }
 0x104   : > { %1629 = vmatpush.msra.mxu2 %v1603_v38 }
 0x105   : > { %v745_v51 = vadd.f32 %v733_v48, %v671_v49 }
 0x107   : > { %v2953_v54 = vadd.f32 %v2887_v23, %v745_v51 }
 0x109   : > { %v2438_v59 = vmul.f32 -1.442695, %v2953_v54 }
 0x10a   : > { %v639_v46 = vpop.permute.xlu2 %638 }
 0x10b   : > { %v673_v40 = vmul.f32 %v2875_v17, %v639_v46  ;;  %v734_v46 = vmul.f32 %v2880_v18, %v2945_v41 }
 0x112   : > { %v2955_v56 = vpop.permute.xlu2 %643 }
 0x11a   : > { %v714_v9 = vpop.permute.xlu2 %713 }
 0x11b   : > { %v737_v21 = vmul.f32 %v2880_v18, %v714_v9 }
 0x11d   : > { %v749_v28 = vadd.f32 %v737_v21, %v675_v22 }
 0x11f   : > { %v2986_v3 = vadd.f32 %v2887_v23, %v749_v28 }
 0x121   : > { %v2442_v10 = vmul.f32 -1.442695, %v2986_v3 }
 0x122   : > { %v2980_v31 = vpop.permute.xlu2 %717 }
 0x128   : > { %v1588_v43 = vpop.xlane.xlu1 %1587 }
 0x129   : > { %v1589_v44 = vmul.f32 %v1588_v43, %v2947_v42 }
 0x12a   : > { %v722_v12 = vpop.permute.xlu2 %721 }
 0x12b   : > { %v1590_v45 = vadd.f32 1e-05, %v1589_v44  ;;  %v739_v36 = vmul.f32 %v2880_v18, %v722_v12 }
 0x12d   : > { %2591 = vrsqrt.f32 %v1590_v45  ;;  %vm1597_vm15 = vweird.f32 %v1590_v45  ;;  %v751_v48 = vadd.f32 %v739_v36, %v677_v37 }
 0x12e   : > { %2593 = vpow2.f32 %v2438_v59  ;;  %v674_v59 = vmul.f32 %v2875_v17, %v2955_v56 }
 0x133   : > { %v2592_v50 = vpop.eup %2591 }
 0x134   : > { %v1592_v52 = vmul.f32 %v2592_v50, %v1590_v45  ;;  %vm1598_vm14 = vweird.f32 %v2592_v50  ;;  %v2594_v19 = vpop.eup %2593 }
 0x135   : > { %vm1599_vm0 = vmor %vm1597_vm15, %vm1598_vm14  ;;  %v2976_v25 = vadd.f32 1.0, %v2594_v19 }
 0x136   : > { %v1593_v53 = vmul.f32 %v2592_v50, %v1592_v52 }
 0x137   : > { %vm882_vm6 = vweird.f32 %v2976_v25 }
 0x138   : > { %v1594_v55 = vmul.f32 0.5, %v1593_v53 }
 0x13a   : > { %v1595_v58 = vsub.f32 1.5, %v1594_v55 }
 0x13c   : > { %v1596_v60 = vmul.f32 %v2592_v50, %v1595_v58 }
 0x13e   : > { %v1600_v62 = vsel %vm1599_vm0, %v2592_v50, %v1596_v60 }
 0x13f   : > { %v1601_v63 = vmul.f32 %v1600_v62, %v2901_v15 }
 0x140   : > { %v609_v2 = vpop.permute.xlu1 %608 }
 0x141   : > { %v667_v5 = vmul.f32 %v2875_v17, %v609_v2  ;;  %v1602_v8 = vmul.f32 %v2961_v61, %v1601_v63  ;;  %v3006_v63 = vadd.f32 %v2887_v23, %v751_v48 }
 0x143   : > { %v741_v13 = vadd.f32 %v729_v4, %v667_v5  ;;  %2471 = vmatmul.msk.f32.vlgmr.msra.gmra.mxu2 %vm1021_vm4, %v1602_v8 }
 0x145   : > { %v2970_v16 = vadd.f32 %v2887_v23, %v741_v13  ;;  %v888_v13 = vand.u32 2147483648, %v2976_v25 }
 0x147   : > { %v2434_v24 = vmul.f32 -1.442695, %v2970_v16 }
 0x149   : > { %2595 = vpow2.f32 %v2434_v24  ;;  %v694_v26 = vpop.permute.xlu1 %693  ;;  %v886_v24 = vand.u32 2147483647, %v2976_v25 }
 0x14a   : > { %v732_v27 = vmul.f32 %v2880_v18, %v694_v26  ;;  %2597 = vrcp.f32 %v2976_v25 }
 0x14b   : > { %vm887_vm12 = vcmp.eq.f32.partialorder %v886_v24, 8.507059e+37 }
 0x14c   : > { %v744_v29 = vadd.f32 %v732_v27, %v670_v14 }
 0x14e   : > { %v2983_v32 = vadd.f32 %v2887_v23, %v744_v29 }
 0x14f   : > { %v2596_v33 = vpop.eup %2595 }
 0x150   : > { %v805_v7 = vadd.f32 1.0, %v2596_v33  ;;  %v2437_v1 = vmul.f32 -1.442695, %v2983_v32  ;;  %v2989_v0 = vpop.eup %2597 }
 0x151   : > { %v878_v11 = vmul.f32 %v2989_v0, %v2976_v25  ;;  %vm883_vm7 = vweird.f32 %v2989_v0 }
 0x152   : > { %2599 = vrcp.f32 %v805_v7  ;;  %v634_v6 = vpop.permute.xlu1 %633  ;;  %v828_v50 = vand.u32 2147483648, %v805_v7  ;;  %v826_v53 = vand.u32 2147483647, %v805_v7  ;;  %vm822_vm2 = vweird.f32 %v805_v7  ;;  %vm3026_vm9 = vmor %vm882_vm6, %vm883_vm7 }
 0x153   : > { %2601 = vpow2.f32 %v2437_v1  ;;  %v879_v44 = vsub.f32 1.0, %v878_v11  ;;  %v672_v19 = vmul.f32 %v2875_v17, %v634_v6  ;;  %v889_v6 = vor.u32 1.1754944e-38, %v888_v13 }
 0x154   : > { %2603 = vpow2.f32 %v2442_v10  ;;  %v829_v4 = vor.u32 1.1754944e-38, %v828_v50  ;;  %vm827_vm5 = vcmp.eq.f32.partialorder %v826_v53, 8.507059e+37 }
 0x155   : > { %v880_v58 = vmul.f32 %v2989_v0, %v879_v44  ;;  %v746_v10 = vadd.f32 %v734_v46, %v672_v19 }
 0x157   : > { %v881_v9 = vadd.f32 %v2989_v0, %v880_v58  ;;  %v3054_v44 = vadd.f32 %v2887_v23, %v746_v10  ;;  %v2572_v10 = vld [vmem:[%s3882_s8 + $0xb] ss:$0 sm:$0xff] }
 0x158   : > { %v2600_v35 = vpop.eup %2599 }
 0x159   : > { %v2602_v38 = vpop.eup %2601  ;;  %v818_v39 = vmul.f32 %v2600_v35, %v805_v7  ;;  %vm823_vm1 = vweird.f32 %v2600_v35  ;;  %v885_v25 = vsel %vm3026_vm9, %v2989_v0, %v881_v9  ;;  %v2439_v53 = vmul.f32 -1.442695, %v3054_v44 }
 0x15a   : > { %v808_v43 = vadd.f32 1.0, %v2602_v38  ;;  %v2604_v51 = vpop.eup %2603  ;;  %vm824_vm3 = vmor %vm822_vm2, %vm823_vm1  ;;  %v738_v38 = vmul.f32 %v2880_v18, %v2980_v31 }
 0x15b   : > { %v706_v45 = vpop.permute.xlu1 %705  ;;  %v819_v47 = vsub.f32 1.0, %v818_v39  ;;  %v3003_v62 = vadd.f32 1.0, %v2604_v51 }
 0x15c   : > { %2605 = vrcp.f32 %v808_v43  ;;  %v735_v49 = vmul.f32 %v2880_v18, %v706_v45  ;;  %vm867_vm8 = vweird.f32 %v808_v43  ;;  %v871_v26 = vand.u32 2147483647, %v808_v43 }
 0x15d   : > { %v820_v52 = vmul.f32 %v2600_v35, %v819_v47  ;;  %v873_v27 = vand.u32 2147483648, %v808_v43  ;;  %vm942_vm2 = vweird.f32 %v3003_v62 }
 0x15e   : > { %v747_v55 = vadd.f32 %v735_v49, %v673_v40  ;;  %vm872_vm13 = vcmp.eq.f32.partialorder %v871_v26, 8.507059e+37  ;;  %v890_v40 = vsel %vm887_vm12, %v889_v6, %v885_v25  ;;  %v948_v25 = vand.u32 2147483648, %v3003_v62 }
 0x15f   : > { %v821_v60 = vadd.f32 %v2600_v35, %v820_v52  ;;  %v874_v34 = vor.u32 1.1754944e-38, %v873_v27  ;;  %v3061_v31 = vmul.f32 %v890_v40, %v2953_v54 }
 0x160   : > { %v3009_v2 = vadd.f32 %v2887_v23, %v747_v55 }
 0x161   : > { %v825_v5 = vsel %vm824_vm3, %v2600_v35, %v821_v60  ;;  %v2444_v35 = vmul.f32 -1.442695, %v3006_v63  ;;  %v1013_v54 = vmul.f32 %v3061_v31, %v3061_v31 }
 0x162   : > { %v2606_v56 = vpop.eup %2605  ;;  %v2440_v41 = vmul.f32 -1.442695, %v3009_v2  ;;  %v830_v8 = vsel %vm827_vm5, %v829_v4, %v825_v5 }
 0x163   : > { %v710_v20 = vpop.permute.xlu1 %709  ;;  %v3018_v21 = vmul.f32 %v830_v8, %v2970_v16  ;;  %v863_v22 = vmul.f32 %v2606_v56, %v808_v43  ;;  %vm868_vm10 = vweird.f32 %v2606_v56  ;;  %v1034_v9 = vsel %vm1021_vm4, %v1013_v54, 0.0 }
 0x164   : > { %v736_v14 = vmul.f32 %v2880_v18, %v710_v20  ;;  %2607 = vpow2.f32 %v2440_v41  ;;  %vm3041_vm11 = vmor %vm867_vm8, %vm868_vm10 }
 0x165   : > { %v1009_v16 = vmul.f32 %v3018_v21, %v3018_v21  ;;  %v864_v29 = vsub.f32 1.0, %v863_v22  ;;  %2609 = vrcp.f32 %v3003_v62 }
 0x166   : > { %v748_v33 = vadd.f32 %v736_v14, %v674_v59 }
 0x167   : > { %v1022_v7 = vsel %vm1021_vm4, %v1009_v16, 0.0  ;;  %v865_v1 = vmul.f32 %v2606_v56, %v864_v29 }
 0x168   : > { %v3038_v11 = vadd.f32 %v2887_v23, %v748_v33  ;;  %1023 = vadd.xlane.f32.xlu1 %v1022_v7 }
 0x169   : > { %v866_v36 = vadd.f32 %v2606_v56, %v865_v1  ;;  %v946_v1 = vand.u32 2147483647, %v3003_v62 }
 0x16a   : > { %v2441_v37 = vmul.f32 -1.442695, %v3038_v11  ;;  %v2608_v0 = vpop.eup %2607 }
 0x16b   : > { %v870_v39 = vsel %vm3041_vm11, %v2606_v56, %v866_v36  ;;  %v3051_v43 = vpop.eup %2609  ;;  %v811_v45 = vadd.f32 1.0, %v2608_v0  ;;  %vm947_vm9 = vcmp.eq.f32.partialorder %v946_v1, 8.507059e+37 }
 0x16c   : > { %2611 = vpow2.f32 %v2441_v37  ;;  %v654_v47 = vpop.permute.xlu1 %653  ;;  %v875_v48 = vsel %vm872_vm13, %v874_v34, %v870_v39  ;;  %v938_v55 = vmul.f32 %v3051_v43, %v3003_v62  ;;  %vm943_vm3 = vweird.f32 %v3051_v43 }
 0x16d   : > { %2613 = vpow2.f32 %v2444_v35  ;;  %v676_v49 = vmul.f32 %v2875_v17, %v654_v47  ;;  %v3058_v50 = vmul.f32 %v875_v48, %v2983_v32  ;;  %v918_v13 = vand.u32 2147483648, %v811_v45  ;;  %vm3098_vm7 = vmor %vm942_vm2, %vm943_vm3 }
 0x16e   : > { %2615 = vrcp.f32 %v811_v45  ;;  %v939_v56 = vsub.f32 1.0, %v938_v55  ;;  %vm912_vm14 = vweird.f32 %v811_v45  ;;  %v916_v20 = vand.u32 2147483647, %v811_v45 }
 0x16f   : > { %v750_v51 = vadd.f32 %v738_v38, %v676_v49  ;;  %v1012_v52 = vmul.f32 %v3058_v50, %v3058_v50  ;;  %2617 = vpow2.f32 %v2439_v53  ;;  %v919_v27 = vor.u32 1.1754944e-38, %v918_v13 }
 0x170   : > { %v940_v22 = vmul.f32 %v3051_v43, %v939_v56  ;;  %vm917_vm1 = vcmp.eq.f32.partialorder %v916_v20, 8.507059e+37  ;;  %v949_v47 = vor.u32 1.1754944e-38, %v948_v25 }
 0x171   : > { %v3069_v58 = vadd.f32 %v2887_v23, %v750_v51  ;;  %v1031_v59 = vsel %vm1021_vm4, %v1012_v52, 0.0 }
 0x172   : > { %v2612_v32 = vpop.eup %2611  ;;  %1032 = vadd.xlane.f32.xlu0 %v1031_v59  ;;  %v941_v7 = vadd.f32 %v3051_v43, %v940_v22 }
 0x173   : > { %v2614_v46 = vpop.eup %2613  ;;  %v812_v60 = vadd.f32 1.0, %v2612_v32  ;;  %v2443_v4 = vmul.f32 -1.442695, %v3069_v58 }
 0x174   : > { %v2616_v5 = vpop.eup %2615  ;;  %v3075_v8 = vadd.f32 1.0, %v2614_v46  ;;  %v945_v49 = vsel %vm3098_vm7, %v3051_v43, %v941_v7 }
 0x175   : > { %2619 = vrcp.f32 %v812_v60  ;;  %v908_v41 = vmul.f32 %v2616_v5, %v811_v45  ;;  %vm913_vm15 = vweird.f32 %v2616_v5  ;;  %v2618_v14 = vpop.eup %2617  ;;  %vm927_vm5 = vweird.f32 %v812_v60 }
 0x176   : > { %2621 = vpow2.f32 %v2443_v4  ;;  %vm3080_vm0 = vmor %vm912_vm14, %vm913_vm15  ;;  %v933_v34 = vand.u32 2147483648, %v812_v60  ;;  %v931_v37 = vand.u32 2147483647, %v812_v60  ;;  %v3102_v38 = vadd.f32 1.0, %v2618_v14 }
 0x177   : > { %v909_v19 = vsub.f32 1.0, %v908_v41  ;;  %2623 = vrcp.f32 %v3075_v8  ;;  %v950_v55 = vsel %vm947_vm9, %v949_v47, %v945_v49  ;;  %vm972_vm15 = vweird.f32 %v3075_v8  ;;  %v1251_v49 = vld [vmem:[%s3880_s6 + $0x70] sm:$0xff] }
 0x178   : > { %v934_v62 = vor.u32 1.1754944e-38, %v933_v34  ;;  %vm932_vm10 = vcmp.eq.f32.partialorder %v931_v37, 8.507059e+37  ;;  %v3121_v43 = vmul.f32 %v950_v55, %v2986_v3  ;;  %vm897_vm3 = vweird.f32 %v3102_v38  ;;  %1297 = vmatpush.msra.mxu0 %v1251_v49  ;;  %v1248_v55 = vld [vmem:[%s3880_s6 + $0x58] sm:$0xff] }
 0x179   : > { %v910_v24 = vmul.f32 %v2616_v5, %v909_v19  ;;  %v903_v34 = vand.u32 2147483648, %v3102_v38 }
 0x17a   : > { %1035 = vadd.xlane.f32.xlu0 %v1034_v9  ;;  %v1017_v3 = vmul.f32 %v3121_v43, %v3121_v43 }
 0x17b   : > { %v2620_v28 = vpop.eup %2619  ;;  %v911_v16 = vadd.f32 %v2616_v5, %v910_v24  ;;  %v904_v37 = vor.u32 1.1754944e-38, %v903_v34 }
 0x17c   : > { %v2622_v29 = vpop.eup %2621  ;;  %v923_v33 = vmul.f32 %v2620_v28, %v812_v60  ;;  %vm928_vm6 = vweird.f32 %v2620_v28 }
 0x17d   : > { %v814_v6 = vadd.f32 1.0, %v2622_v29  ;;  %v915_v12 = vsel %vm3080_vm0, %v2616_v5, %v911_v16  ;;  %v2624_v40 = vpop.eup %2623  ;;  %vm929_vm8 = vmor %vm927_vm5, %vm928_vm6  ;;  %v976_v29 = vand.u32 2147483647, %v3075_v8 }
 0x17e   : > { %v920_v35 = vsel %vm917_vm1, %v919_v27, %v915_v12  ;;  %v924_v36 = vsub.f32 1.0, %v923_v33  ;;  %v968_v52 = vmul.f32 %v2624_v40, %v3075_v8  ;;  %vm973_vm0 = vweird.f32 %v2624_v40 }
 0x17f   : > { %2625 = vrcp.f32 %v814_v6  ;;  %v3105_v39 = vmul.f32 %v920_v35, %v3009_v2  ;;  %vm957_vm11 = vweird.f32 %v814_v6  ;;  %v963_v60 = vand.u32 2147483648, %v814_v6  ;;  %vm974_vm1 = vmor %vm972_vm15, %vm973_vm0 }
 0x180   : > { %v925_v45 = vmul.f32 %v2620_v28, %v924_v36  ;;  %2627 = vrcp.f32 %v3102_v38  ;;  %v969_v4 = vsub.f32 1.0, %v968_v52  ;;  %v961_v41 = vand.u32 2147483647, %v814_v6 }
 0x181   : > { %1640 = vrot.lane.b32.xlu1 %v2572_v10, %s2707_s1  ;;  %v1015_v48 = vmul.f32 %v3105_v39, %v3105_v39  ;;  %v978_v27 = vand.u32 2147483648, %v3075_v8  ;;  %vm977_vm2 = vcmp.eq.f32.partialorder %v976_v29, 8.507059e+37  ;;  %v901_v35 = vand.u32 2147483647, %v3102_v38 }
 0x182   : > { %v926_v51 = vadd.f32 %v2620_v28, %v925_v45  ;;  %v970_v20 = vmul.f32 %v2624_v40, %v969_v4  ;;  %vm962_vm14 = vcmp.eq.f32.partialorder %v961_v41, 8.507059e+37  ;;  %v1244_v4 = vld [vmem:[%s3880_s6 + $0x38] sm:$0xff]  ;;  %v1242_v41 = vld [vmem:[%s3880_s6 + $0x28] sm:$0xff] }
 0x183   : > { %v1040_v2 = vsel %vm1021_vm4, %v1015_v48, 0.0  ;;  %v979_v1 = vor.u32 1.1754944e-38, %v978_v27  ;;  %vm902_vm7 = vcmp.eq.f32.partialorder %v901_v35, 8.507059e+37 }
 0x184   : > { %1041 = vadd.xlane.f32.xlu2 %v1040_v2  ;;  %v930_v53 = vsel %vm929_vm8, %v2620_v28, %v926_v51  ;;  %v1046_v28 = vsel %vm1021_vm4, %v1017_v3, 0.0  ;;  %v971_v16 = vadd.f32 %v2624_v40, %v970_v20  ;;  %v1252_v51 = vld [vmem:[%s3880_s6 + $0x78] sm:$0xff]  ;;  %v1250_v2 = vld [vmem:[%s3880_s6 + $0x68] sm:$0xff]  ;;  %v1237_v20 = vld [vmem:[%s3880_s6] sm:$0xff] }
 0x185   : > { %v2626_v59 = vpop.eup %2625  ;;  %v935_v32 = vsel %vm932_vm10, %v934_v62, %v930_v53  ;;  %v664_v62 = vpop.permute.xlu2 %663  ;;  %1350 = vmatpush.msra.mxu1 %v1252_v51  ;;  %v1247_v53 = vld [vmem:[%s3880_s6 + $0x50] sm:$0xff]  ;;  %v1238_v3 = vld [vmem:[%s3880_s6 + $0x8] sm:$0xff] }
 0x186   : > { %v3118_v54 = vmul.f32 %v935_v32, %v3038_v11  ;;  %v953_v46 = vmul.f32 %v2626_v59, %v814_v6  ;;  %vm958_vm12 = vweird.f32 %v2626_v59  ;;  %v2628_v9 = vpop.eup %2627  ;;  %v964_v11 = vor.u32 1.1754944e-38, %v963_v60  ;;  %v1245_v32 = vld [vmem:[%s3880_s6 + $0x40] sm:$0xff]  ;;  %v1243_v60 = vld [vmem:[%s3880_s6 + $0x30] sm:$0xff] }
 0x187   : > { %vm959_vm13 = vmor %vm957_vm11, %vm958_vm12  ;;  %v893_v24 = vmul.f32 %v2628_v9, %v3102_v38  ;;  %v975_v25 = vsel %vm974_vm1, %v2624_v40, %v971_v16  ;;  %vm898_vm5 = vweird.f32 %v2628_v9  ;;  %1351 = vmatpush.msra.mxu1 %v1250_v2 }
 0x188   : > { %v1016_v5 = vmul.f32 %v3118_v54, %v3118_v54  ;;  %v954_v56 = vsub.f32 1.0, %v953_v46  ;;  %v980_v12 = vsel %vm977_vm2, %v979_v1, %v975_v25  ;;  %vm899_vm6 = vmor %vm897_vm3, %vm898_vm5  ;;  %v1246_v46 = vld [vmem:[%s3880_s6 + $0x48] sm:$0xff] }
 0x189   : > { %v894_v33 = vsub.f32 1.0, %v893_v24  ;;  %v3143_v36 = vmul.f32 %v980_v12, %v3006_v63  ;;  %1352 = vmatpush.msra.mxu1 %v1248_v55  ;;  %v678_v24 = vmul.f32 %v2875_v17, %v664_v62  ;;  %v1419_v17 = vld [vmem:[%s3882_s8] sm:$0xff] }
 0x18a   : > { %v1043_v13 = vsel %vm1021_vm4, %v1016_v5, 0.0  ;;  %v955_v19 = vmul.f32 %v2626_v59, %v954_v56  ;;  %v1241_v56 = vld [vmem:[%s3880_s6 + $0x20] sm:$0xff] }
 0x18b   : > { %1044 = vadd.xlane.f32.xlu0 %v1043_v13  ;;  %v895_v6 = vmul.f32 %v2628_v9, %v894_v33  ;;  %v1019_v40 = vmul.f32 %v3143_v36, %v3143_v36  ;;  %1353 = vmatpush.msra.mxu1 %v1246_v46  ;;  %v1240_v13 = vld [vmem:[%s3880_s6 + $0x18] sm:$0xff]  ;;  %v1421_v46 = vld [vmem:[%s3882_s8 + $0x10] sm:$0xff] }
 0x18c   : > { %v956_v22 = vadd.f32 %v2626_v59, %v955_v19 }
 0x18d   : > { %v896_v8 = vadd.f32 %v2628_v9, %v895_v6  ;;  %v1052_v47 = vsel %vm1021_vm4, %v1019_v40, 0.0  ;;  %v726_v52 = vpop.permute.xlu2 %725  ;;  %1354 = vmatpush.msra.mxu1 %v1244_v4 }
 0x18e   : > { %v960_v14 = vsel %vm959_vm13, %v2626_v59, %v956_v22  ;;  %v1027_v59 = vpop.xlane.xlu0 %1026 }
 0x18f   : > { %v965_v26 = vsel %vm962_vm14, %v964_v11, %v960_v14  ;;  %v900_v0 = vsel %vm899_vm6, %v2628_v9, %v896_v8  ;;  %v1066_v5 = vmul.f32 %v2947_v42, %v1027_v59  ;;  %1355 = vmatpush.msra.mxu1 %v1242_v41  ;;  %v1239_v9 = vld [vmem:[%s3880_s6 + $0x10] sm:$0xff]  ;;  %v740_v14 = vmul.f32 %v2880_v18, %v726_v52 }
 0x190   : > { %v3134_v7 = vmul.f32 %v965_v26, %v3069_v58  ;;  %v905_v45 = vsel %vm902_vm7, %v904_v37, %v900_v0 }
 0x191   : > { %v3149_v48 = vmul.f32 %v905_v45, %v3054_v44  ;;  %v1249_v44 = vld [vmem:[%s3880_s6 + $0x60] sm:$0xff]  ;;  %v1078_v19 = vadd.f32 1e-05, %v1066_v5  ;;  %1356 = vmatpush.msra.mxu1 %v1240_v13  ;;  %v752_v33 = vadd.f32 %v740_v14, %v678_v24 }
 0x192   : > { %v1018_v10 = vmul.f32 %v3134_v7, %v3134_v7  ;;  %1298 = vmatpush.msra.mxu0 %v1249_v44 }
 0x193   : > { %1047 = vadd.xlane.f32.xlu0 %v1046_v28  ;;  %v1014_v38 = vmul.f32 %v3149_v48, %v3149_v48  ;;  %1357 = vmatpush.msra.mxu1 %v1238_v3  ;;  %2629 = vrsqrt.f32 %v1078_v19  ;;  %v3218_v18 = vadd.f32 %v2887_v23, %v752_v33  ;;  %v1420_v23 = vld [vmem:[%s3882_s8 + $0x8] sm:$0xff]  ;;  %vm1105_vm9 = vweird.f32 %v1078_v19 }
 0x194   : > { %v1049_v58 = vsel %vm1021_vm4, %v1018_v10, 0.0  ;;  %1299 = vmatpush.msra.mxu0 %v1247_v53 }
 0x195   : > { %v1037_v63 = vsel %vm1021_vm4, %v1014_v38, 0.0  ;;  %v1030_v11 = vpop.xlane.xlu2 %1029  ;;  %v2445_v8 = vmul.f32 -1.442695, %v3218_v18 }
 0x196   : > { %1300 = vmatpush.msra.mxu0 %v1245_v32  ;;  %v1067_v22 = vmul.f32 %v2947_v42, %v1030_v11 }
 0x198   : > { %1301 = vmatpush.msra.mxu0 %v1243_v60  ;;  %v3206_v26 = vadd.f32 1e-05, %v1067_v22 }
 0x199   : > { %v3209_v16 = vpop.eup %2629 }
 0x19a   : > { %1302 = vmatpush.msra.mxu0 %v1241_v56  ;;  %2631 = vrsqrt.f32 %v3206_v26  ;;  %v1100_v1 = vmul.f32 %v3209_v16, %v1078_v19  ;;  %vm1106_vm10 = vweird.f32 %v3209_v16  ;;  %vm1115_vm14 = vweird.f32 %v3206_v26 }
 0x19b   : > { %1050 = vadd.xlane.f32.xlu0 %v1049_v58  ;;  %vm3242_vm13 = vmor %vm1105_vm9, %vm1106_vm10 }
 0x19c   : > { %1303 = vmatpush.msra.mxu0 %v1239_v9  ;;  %v1101_v6 = vmul.f32 %v3209_v16, %v1100_v1 }
 0x19e   : > { %1304 = vmatpush.msra.mxu0 %v1237_v20  ;;  %v1102_v37 = vmul.f32 0.5, %v1101_v6 }
 0x1a0   : > { %v3220_v25 = vpop.eup %2631 }
 0x1a1   : > { %v1110_v0 = vmul.f32 %v3220_v25, %v3206_v26  ;;  %vm1116_vm15 = vweird.f32 %v3220_v25 }
 0x1a2   : > { %vm1117_vm0 = vmor %vm1115_vm14, %vm1116_vm15 }
 0x1a3   : > { %1053 = vadd.xlane.f32.xlu0 %v1052_v47  ;;  %v1103_v47 = vsub.f32 1.5, %v1102_v37  ;;  %v1111_v38 = vmul.f32 %v3220_v25, %v1110_v0 }
 0x1a5   : > { %v1104_v53 = vmul.f32 %v3209_v16, %v1103_v47  ;;  %v1112_v55 = vmul.f32 0.5, %v1111_v38 }
 0x1a7   : > { %v1113_v19 = vsub.f32 1.5, %v1112_v55  ;;  %v1108_v20 = vsel %vm3242_vm13, %v3209_v16, %v1104_v53 }
 0x1a8   : > { %v1210_v3 = vmul.f32 %v1108_v20, %v2896_v57 }
 0x1a9   : > { %v1114_v22 = vmul.f32 %v3220_v25, %v1113_v19 }
 0x1aa   : > { %v1226_v26 = vmul.f32 %v2961_v61, %v1210_v3 }
 0x1ab   : > { %1038 = vadd.xlane.f32.xlu1 %v1037_v63 }
 0x1b7   : > { %1443 = vrot.lane.b32.xlu0 %v1419_v17, %s2707_s1 }
 0x1bf   : > { %1447 = vrot.lane.b32.xlu0 %v1421_v46, %s2707_s1 }
 0x1c4   : > { %1445 = vrot.lane.b32.xlu1 %v1420_v23, %s2707_s1 }
 0x1c6   : > { %v3248_v5 = vpop.f32.mrf.mxu2 }
 0x1db   : > { %v1024_v27 = vpop.xlane.xlu1 %1023 }
 0x1dc   : > { %v1065_v28 = vmul.f32 %v2947_v42, %v1024_v27  ;;  %v1422_v27 = vld [vmem:[%s3882_s8 + $0x18] sm:$0xff] }
 0x1dd   : > { %1449 = vrot.lane.b32.xlu0 %v1422_v27, %s2707_s1 }
 0x1de   : > { %v1077_v29 = vadd.f32 1e-05, %v1065_v28 }
 0x1e0   : > { %2633 = vrsqrt.f32 %v1077_v29  ;;  %vm1095_vm11 = vweird.f32 %v1077_v29 }
 0x1e5   : > { %v1033_v10 = vpop.xlane.xlu0 %1032 }
 0x1e6   : > { %v2634_v12 = vpop.eup %2633  ;;  %v1068_v34 = vmul.f32 %v2947_v42, %v1033_v10  ;;  %v1423_v10 = vld [vmem:[%s3882_s8 + $0x20] sm:$0xff] }
 0x1e7   : > { %v1090_v35 = vmul.f32 %v2634_v12, %v1077_v29  ;;  %vm1096_vm8 = vweird.f32 %v2634_v12  ;;  %v1118_v29 = vsel %vm1117_vm0, %v3220_v25, %v1114_v22  ;;  %1451 = vrot.lane.b32.xlu1 %v1423_v10, %s2707_s1 }
 0x1e8   : > { %v3225_v58 = vadd.f32 1e-05, %v1068_v34  ;;  %vm1097_vm12 = vmor %vm1095_vm11, %vm1096_vm8  ;;  %v1211_v57 = vmul.f32 %v1118_v29, %v2906_v30 }
 0x1e9   : > { %v1091_v40 = vmul.f32 %v2634_v12, %v1090_v35 }
 0x1ea   : > { %2635 = vrsqrt.f32 %v3225_v58  ;;  %vm1125_vm2 = vweird.f32 %v3225_v58  ;;  %v1227_v25 = vmul.f32 %v2961_v61, %v1211_v57 }
 0x1eb   : > { %2637 = vpow2.f32 %v2445_v8  ;;  %v1092_v45 = vmul.f32 0.5, %v1091_v40 }
 0x1ed   : > { %v1093_v63 = vsub.f32 1.5, %v1092_v45  ;;  %v1036_v62 = vpop.xlane.xlu0 %1035 }
 0x1ee   : > { %v1069_v49 = vmul.f32 %v2947_v42, %v1036_v62 }
 0x1ef   : > { %v1094_v51 = vmul.f32 %v2634_v12, %v1093_v63 }
 0x1f0   : > { %v2636_v44 = vpop.eup %2635  ;;  %v1081_v2 = vadd.f32 1e-05, %v1069_v49 }
 0x1f1   : > { %v2638_v52 = vpop.eup %2637  ;;  %v1120_v59 = vmul.f32 %v2636_v44, %v3225_v58  ;;  %v1098_v32 = vsel %vm1097_vm12, %v2634_v12, %v1094_v51  ;;  %vm1126_vm1 = vweird.f32 %v2636_v44 }
 0x1f2   : > { %2639 = vrsqrt.f32 %v1081_v2  ;;  %v1209_v4 = vmul.f32 %v1098_v32, %v3018_v21  ;;  %v3250_v41 = vadd.f32 1.0, %v2638_v52  ;;  %vm1127_vm3 = vmor %vm1125_vm2, %vm1126_vm1  ;;  %vm1135_vm6 = vweird.f32 %v1081_v2 }
 0x1f3   : > { %v1641_v56 = vpop.permute.xlu1 %1640  ;;  %v1121_v11 = vmul.f32 %v2636_v44, %v1120_v59 }
 0x1f4   : > { %v1643_v9 = vmul.f32 %v1641_v56, %v3248_v5  ;;  %v1225_v13 = vmul.f32 %v2961_v61, %v1209_v4  ;;  %2641 = vrcp.f32 %v3250_v41  ;;  %vm987_vm7 = vweird.f32 %v3250_v41 }
 0x1f5   : > { %v1122_v24 = vmul.f32 0.5, %v1121_v11  ;;  %v993_v0 = vand.u32 2147483648, %v3250_v41  ;;  %v991_v45 = vand.u32 2147483647, %v3250_v41 }
 0x1f6   : > { %2446 = vmatmul.msk.f32.vlgmr.msra.gmra.mxu0 %vm1021_vm4, %v1225_v13  ;;  %2458 = vmatmul.msk.f32.vlgmr.msra.gmra.mxu1 %vm1021_vm4, %v1225_v13 }
 0x1f7   : > { %1645 = vrot.lane.b32.xlu2 %v1643_v9, %s2707_s1  ;;  %v1123_v28 = vsub.f32 1.5, %v1122_v24  ;;  %v994_v38 = vor.u32 1.1754944e-38, %v993_v0  ;;  %vm992_vm11 = vcmp.eq.f32.partialorder %v991_v45, 8.507059e+37 }
 0x1f8   : > { %v2640_v21 = vpop.eup %2639 }
 0x1f9   : > { %v1130_v14 = vmul.f32 %v2640_v21, %v1081_v2  ;;  %v1124_v1 = vmul.f32 %v2636_v44, %v1123_v28  ;;  %vm1136_vm5 = vweird.f32 %v2640_v21 }
 0x1fa   : > { %v2642_v33 = vpop.eup %2641  ;;  %vm1137_vm9 = vmor %vm1135_vm6, %vm1136_vm5 }
 0x1fb   : > { %v1131_v16 = vmul.f32 %v2640_v21, %v1130_v14  ;;  %v983_v6 = vmul.f32 %v2642_v33, %v3250_v41  ;;  %v1128_v34 = vsel %vm1127_vm3, %v2636_v44, %v1124_v1  ;;  %vm988_vm8 = vweird.f32 %v2642_v33 }
 0x1fc   : > { %v1212_v30 = vmul.f32 %v1128_v34, %v3058_v50  ;;  %vm989_vm10 = vmor %vm987_vm7, %vm988_vm8  ;;  %v1042_v50 = vpop.xlane.xlu2 %1041 }
 0x1fd   : > { %v1132_v17 = vmul.f32 0.5, %v1131_v16  ;;  %v984_v8 = vsub.f32 1.0, %v983_v6  ;;  %v1071_v49 = vmul.f32 %v2947_v42, %v1042_v50 }
 0x1fe   : > { %2447 = vmatmul.msk.f32.gmra.mxu0 %vm1021_vm4, %v1226_v26  ;;  %2459 = vmatmul.msk.f32.gmra.mxu1 %vm1021_vm4, %v1226_v26  ;;  %v1228_v58 = vmul.f32 %v2961_v61, %v1212_v30  ;;  %v1045_v62 = vpop.xlane.xlu0 %1044 }
 0x1ff   : > { %v1133_v12 = vsub.f32 1.5, %v1132_v17  ;;  %v985_v37 = vmul.f32 %v2642_v33, %v984_v8  ;;  %v1083_v2 = vadd.f32 1e-05, %v1071_v49  ;;  %v1072_v53 = vmul.f32 %v2947_v42, %v1045_v62 }
 0x201   : > { %v1134_v35 = vmul.f32 %v2640_v21, %v1133_v12  ;;  %v986_v23 = vadd.f32 %v2642_v33, %v985_v37  ;;  %2643 = vrsqrt.f32 %v1083_v2  ;;  %v1084_v59 = vadd.f32 1e-05, %v1072_v53 }
 0x202   : > { %vm1155_vm0 = vweird.f32 %v1083_v2 }
 0x203   : > { %v1138_v40 = vsel %vm1137_vm9, %v2640_v21, %v1134_v35  ;;  %v990_v63 = vsel %vm989_vm10, %v2642_v33, %v986_v23  ;;  %2645 = vrsqrt.f32 %v1084_v59  ;;  %vm1165_vm3 = vweird.f32 %v1084_v59 }
 0x204   : > { %v1213_v47 = vmul.f32 %v1138_v40, %v3061_v31  ;;  %v995_v44 = vsel %vm992_vm11, %v994_v38, %v990_v63 }
 0x205   : > { %v3296_v52 = vmul.f32 %v995_v44, %v3218_v18  ;;  %v1424_v18 = vld [vmem:[%s3882_s8 + $0x28] sm:$0xff] }
 0x206   : > { %2448 = vmatmul.msk.f32.gmra.mxu0 %vm1021_vm4, %v1227_v25  ;;  %2460 = vmatmul.msk.f32.gmra.mxu1 %vm1021_vm4, %v1227_v25  ;;  %v1229_v51 = vmul.f32 %v2961_v61, %v1213_v47  ;;  %v1048_v55 = vpop.xlane.xlu0 %1047 }
 0x207   : > { %v1020_v31 = vmul.f32 %v3296_v52, %v3296_v52  ;;  %v2644_v4 = vpop.eup %2643  ;;  %1453 = vrot.lane.b32.xlu0 %v1424_v18, %s2707_s1  ;;  %v1073_v41 = vmul.f32 %v2947_v42, %v1048_v55 }
 0x208   : > { %v1150_v9 = vmul.f32 %v2644_v4, %v1083_v2  ;;  %vm1156_vm14 = vweird.f32 %v2644_v4 }
 0x209   : > { %v1055_v60 = vsel %vm1021_vm4, %v1020_v31, 0.0  ;;  %v1085_v19 = vadd.f32 1e-05, %v1073_v41  ;;  %v2646_v11 = vpop.eup %2645  ;;  %vm1157_vm1 = vmor %vm1155_vm0, %vm1156_vm14 }
 0x20a   : > { %v1151_v20 = vmul.f32 %v2644_v4, %v1150_v9  ;;  %v1160_v14 = vmul.f32 %v2646_v11, %v1084_v59  ;;  %vm1166_vm2 = vweird.f32 %v2646_v11 }
 0x20b   : > { %vm1167_vm5 = vmor %vm1165_vm3, %vm1166_vm2  ;;  %vm1175_vm7 = vweird.f32 %v1085_v19  ;;  %vm1999_vm3 = vcmask 785408  }
 0x20c   : > { %v1152_v24 = vmul.f32 0.5, %v1151_v20  ;;  %v1161_v29 = vmul.f32 %v2646_v11, %v1160_v14  ;;  %v1652_v14 = vld [vmem:[%s3884_s10 + $0x10] sm:$0xff] }
 0x20e   : > { %2449 = vmatmul.msk.f32.gmra.mxu0 %vm1021_vm4, %v1228_v58  ;;  %2461 = vmatmul.msk.f32.gmra.mxu1 %vm1021_vm4, %v1228_v58  ;;  %v1051_v13 = vpop.xlane.xlu0 %1050  ;;  %v1153_v16 = vsub.f32 1.5, %v1152_v24  ;;  %v1162_v25 = vmul.f32 0.5, %v1161_v29 }
 0x20f   : > { %v1074_v22 = vmul.f32 %v2947_v42, %v1051_v13 }
 0x210   : > { %v1154_v10 = vmul.f32 %v2644_v4, %v1153_v16  ;;  %v1163_v37 = vsub.f32 1.5, %v1162_v25  ;;  %v1654_v16 = vld [vmem:[%s3884_s10 + $0x20] sm:$0xff] }
 0x211   : > { %v3309_v28 = vadd.f32 1e-05, %v1074_v22  ;;  %v1651_v22 = vld [vmem:[%s3884_s10 + $0x8] sm:$0xff] }
 0x212   : > { %v1158_v0 = vsel %vm1157_vm1, %v2644_v4, %v1154_v10  ;;  %v1164_v45 = vmul.f32 %v2646_v11, %v1163_v37  ;;  %v1427_v10 = vld [vmem:[%s3882_s8 + $0x40] sm:$0xff]  ;;  %v1656_v37 = vld [vmem:[%s3884_s10 + $0x30] sm:$0xff] }
 0x213   : > { %v1215_v23 = vmul.f32 %v1158_v0, %v3105_v39  ;;  %v1425_v39 = vld [vmem:[%s3882_s8 + $0x30] sm:$0xff]  ;;  %vm1185_vm10 = vweird.f32 %v3309_v28 }
 0x214   : > { %v1168_v62 = vsel %vm1167_vm5, %v2646_v11, %v1164_v45 }
 0x215   : > { %v1231_v47 = vmul.f32 %v2961_v61, %v1215_v23  ;;  %v1429_v23 = vld [vmem:[%s3882_s8 + $0x50] sm:$0xff] }
 0x216   : > { %2450 = vmatmul.msk.f32.gmra.mxu0 %vm1021_vm4, %v1229_v51  ;;  %2462 = vmatmul.msk.f32.gmra.mxu1 %vm1021_vm4, %v1229_v51  ;;  %v1054_v33 = vpop.xlane.xlu0 %1053  ;;  %v1216_v51 = vmul.f32 %v1168_v62, %v3118_v54  ;;  %v2573_v54 = vld [vmem:[%s3881_s7 + $0xb] ss:$0 sm:$0xff] }
 0x217   : > { %v1075_v6 = vmul.f32 %v2947_v42, %v1054_v33  ;;  %v1637_v18 = vmul.f32 %v2573_v54, %v3248_v5 }
 0x218   : > { %v1232_v31 = vmul.f32 %v2961_v61, %v1216_v51  ;;  %v1657_v51 = vld [vmem:[%s3884_s10 + $0x38] sm:$0xff] }
 0x219   : > { %v1087_v30 = vadd.f32 1e-05, %v1075_v6 }
 0x21b   : > { %vm1195_vm14 = vweird.f32 %v1087_v30 }
 0x21e   : > { %v1039_v32 = vpop.xlane.xlu1 %1038 }
 0x21f   : > { %v1070_v46 = vmul.f32 %v2947_v42, %v1039_v32 }
 0x220   : > { %1056 = vadd.xlane.f32.xlu2 %v1055_v60 }
 0x221   : > { %v1082_v56 = vadd.f32 1e-05, %v1070_v46 }
 0x223   : > { %2647 = vrsqrt.f32 %v1082_v56  ;;  %vm1145_vm13 = vweird.f32 %v1082_v56 }
 0x224   : > { %2649 = vrsqrt.f32 %v1085_v19 }
 0x225   : > { %2651 = vrsqrt.f32 %v3309_v28 }
 0x226   : > { %2653 = vrsqrt.f32 %v1087_v30 }
 0x229   : > { %v2648_v21 = vpop.eup %2647 }
 0x22a   : > { %v1140_v3 = vmul.f32 %v2648_v21, %v1082_v56  ;;  %vm1146_vm12 = vweird.f32 %v2648_v21  ;;  %v2650_v1 = vpop.eup %2649 }
 0x22b   : > { %vm1147_vm15 = vmor %vm1145_vm13, %vm1146_vm12  ;;  %v1170_v12 = vmul.f32 %v2650_v1, %v1085_v19  ;;  %v2652_v40 = vpop.eup %2651  ;;  %vm1176_vm6 = vweird.f32 %v2650_v1  ;;  %vm1662_vm13 = vcmask 64512  }
 0x22c   : > { %v1141_v27 = vmul.f32 %v2648_v21, %v1140_v3  ;;  %v2654_v49 = vpop.eup %2653  ;;  %vm1177_vm8 = vmor %vm1175_vm7, %vm1176_vm6  ;;  %vm1186_vm9 = vweird.f32 %v2652_v40 }
 0x22d   : > { %v1171_v58 = vmul.f32 %v2650_v1, %v1170_v12  ;;  %v1190_v53 = vmul.f32 %v2654_v49, %v1087_v30  ;;  %vm1187_vm11 = vmor %vm1185_vm10, %vm1186_vm9  ;;  %vm1196_vm12 = vweird.f32 %v2654_v49  ;;  %v1655_v12 = vld [vmem:[%s3884_s10 + $0x28] sm:$0xff] }
 0x22e   : > { %v1142_v26 = vmul.f32 0.5, %v1141_v27  ;;  %v1444_v27 = vpop.permute.xlu0 %1443  ;;  %v1428_v30 = vld [vmem:[%s3882_s8 + $0x48] sm:$0xff] }
 0x22f   : > { %v1172_v50 = vmul.f32 0.5, %v1171_v58  ;;  %v1191_v59 = vmul.f32 %v2654_v49, %v1190_v53 }
 0x230   : > { %v1143_v57 = vsub.f32 1.5, %v1142_v26 }
 0x231   : > { %v1173_v38 = vsub.f32 1.5, %v1172_v50  ;;  %v1192_v4 = vmul.f32 0.5, %v1191_v59 }
 0x232   : > { %v1144_v17 = vmul.f32 %v2648_v21, %v1143_v57  ;;  %v1426_v57 = vld [vmem:[%s3882_s8 + $0x38] sm:$0xff] }
 0x233   : > { %v1174_v44 = vmul.f32 %v2650_v1, %v1173_v38 }
 0x234   : > { %v1148_v34 = vsel %vm1147_vm15, %v2648_v21, %v1144_v17  ;;  %v1650_v21 = vld [vmem:[%s3884_s10] sm:$0xff]  ;;  %vm1197_vm15 = vmor %vm1195_vm14, %vm1196_vm12 }
 0x235   : > { %v1214_v8 = vmul.f32 %v1148_v34, %v3149_v48  ;;  %v1180_v48 = vmul.f32 %v2652_v40, %v3309_v28  ;;  %v1178_v32 = vsel %vm1177_vm8, %v2650_v1, %v1174_v44 }
 0x236   : > { %v1217_v46 = vmul.f32 %v1178_v32, %v3121_v43  ;;  %v1193_v43 = vsub.f32 1.5, %v1192_v4  ;;  %v1446_v29 = vpop.permute.xlu1 %1445  ;;  %v1448_v17 = vpop.permute.xlu0 %1447  ;;  %v1771_v4 = vld [vmem:[%s3883_s9 + $0x38] sm:$0xff] }
 0x237   : > { %v1230_v35 = vmul.f32 %v2961_v61, %v1214_v8  ;;  %v1181_v63 = vmul.f32 %v2652_v40, %v1180_v48  ;;  %v3338_v61 = vld [vmem:[%s3878_s4] ss:$0 sm:$0xff]  ;;  %1816 = vmatpush.msrb.mxu2 %v1771_v4 }
 0x238   : > { %1455 = vrot.lane.b32.xlu2 %v1425_v39, %s2707_s1  ;;  %v1233_v56 = vmul.f32 %v3338_v61, %v1217_v46  ;;  %v1194_v11 = vmul.f32 %v2654_v49, %v1193_v43  ;;  %v1767_v43 = vld [vmem:[%s3883_s9 + $0x18] sm:$0xff] }
 0x239   : > { %2451 = vmatmul.msk.f32.gmra.mxu0 %vm1021_vm4, %v1230_v35  ;;  %2463 = vmatmul.msk.f32.gmra.mxu1 %vm1021_vm4, %v1230_v35  ;;  %v1182_v2 = vmul.f32 0.5, %v1181_v63 }
 0x23a   : > { %v1198_v3 = vsel %vm1197_vm15, %v2654_v49, %v1194_v11  ;;  %v1660_v11 = vld [vmem:[%s3884_s10 + $0x50] sm:$0xff] }
 0x23b   : > { %v1183_v55 = vsub.f32 1.5, %v1182_v2 }
 0x23d   : > { %v1184_v60 = vmul.f32 %v2652_v40, %v1183_v55  ;;  %v1658_v55 = vld [vmem:[%s3884_s10 + $0x40] sm:$0xff] }
 0x23f   : > { %v1188_v41 = vsel %vm1187_vm11, %v2652_v40, %v1184_v60 }
 0x240   : > { %v1218_v19 = vmul.f32 %v1188_v41, %v3134_v7  ;;  %v1219_v7 = vmul.f32 %v1198_v3, %v3143_v36  ;;  %v1653_v36 = vld [vmem:[%s3884_s10 + $0x18] sm:$0xff]  ;;  %v1766_v41 = vld [vmem:[%s3883_s9 + $0x10] sm:$0xff] }
 0x241   : > { %2452 = vmatmul.msk.f32.gmra.mxu0 %vm1021_vm4, %v1231_v47  ;;  %2464 = vmatmul.msk.f32.gmra.mxu1 %vm1021_vm4, %v1231_v47 }
 0x242   : > { %v1234_v5 = vmul.f32 %v3338_v61, %v1218_v19  ;;  %v1235_v24 = vmul.f32 %v3338_v61, %v1219_v7  ;;  %v1659_v19 = vld [vmem:[%s3884_s10 + $0x48] sm:$0xff] }
 0x249   : > { %2453 = vmatmul.msk.f32.gmra.mxu0 %vm1021_vm4, %v1232_v31  ;;  %2465 = vmatmul.msk.f32.gmra.mxu1 %vm1021_vm4, %v1232_v31  ;;  %v1430_v31 = vld [vmem:[%s3882_s8 + $0x58] sm:$0xff] }
 0x24f   : > { %v1450_v34 = vpop.permute.xlu0 %1449 }
 0x251   : > { %v1646_v9 = vpop.permute.xlu2 %1645  ;;  %2454 = vmatmul.msk.f32.gmra.mxu0 %vm1021_vm4, %v1233_v56  ;;  %2466 = vmatmul.msk.f32.gmra.mxu1 %vm1021_vm4, %v1233_v56  ;;  %v1769_v56 = vld [vmem:[%s3883_s9 + $0x28] sm:$0xff] }
 0x252   : > { %v1648_v13 = vadd.f32 %v1646_v9, %v1637_v18  ;;  %v1768_v18 = vld [vmem:[%s3883_s9 + $0x20] sm:$0xff]  ;;  %v1765_v9 = vld [vmem:[%s3883_s9 + $0x8] sm:$0xff] }
 0x254   : > { %v1649_v20 = vmul.f32 0.35355338, %v1648_v13  ;;  %v1764_v13 = vld [vmem:[%s3883_s9] sm:$0xff] }
 0x256   : > { %1714 = vmatpush.msra.mxu3 %v1649_v20 }
 0x257   : > { %2472 = vmatmul.msk.f32.vlgmr.msra.gmra.mxu3 %vm1662_vm13, %v1650_v21  ;;  %v1395_v21 = vld [vmem:[%s3881_s7] sm:$0xff] }
 0x259   : > { %2455 = vmatmul.msk.f32.gmra.mxu0 %vm1021_vm4, %v1234_v5  ;;  %2467 = vmatmul.msk.f32.gmra.mxu1 %vm1021_vm4, %v1234_v5  ;;  %v1452_v58 = vpop.permute.xlu1 %1451  ;;  %v1661_v5 = vld [vmem:[%s3884_s10 + $0x58] sm:$0xff] }
 0x25f   : > { %2473 = vmatmul.msk.f32.gmra.mxu3 %vm1662_vm13, %v1651_v22 }
 0x261   : > { %2456 = vmatmul.msk.f32.gmra.mxu0 %vm1021_vm4, %v1235_v24  ;;  %2468 = vmatmul.msk.f32.gmra.mxu1 %vm1021_vm4, %v1235_v24 }
 0x267   : > { %2474 = vmatmul.msk.f32.gmra.mxu3 %vm1662_vm13, %v1652_v14 }
 0x26f   : > { %2475 = vmatmul.msk.f32.gmra.mxu3 %vm1662_vm13, %v1653_v36 }
 0x273   : > { %v3368_v26 = vpop.f32.mrf.mxu0 }
 0x274   : > { %v1479_v28 = vmul.f32 %v1444_v27, %v3368_v26  ;;  %v1407_v3 = vmul.f32 %v1395_v21, %v3368_v26  ;;  %v1396_v27 = vld [vmem:[%s3881_s7 + $0x8] sm:$0xff] }
 0x276   : > { %1503 = vrot.lane.b32.xlu1 %v1479_v28, %s2707_s1 }
 0x277   : > { %2476 = vmatmul.msk.f32.gmra.mxu3 %vm1662_vm13, %v1654_v16 }
 0x279   : > { %v1454_v59 = vpop.permute.xlu0 %1453 }
 0x27b   : > { %v3376_v33 = vpop.f32.mrf.mxu0 }
 0x27c   : > { %v1480_v1 = vmul.f32 %v1446_v29, %v3376_v33  ;;  %v1408_v28 = vmul.f32 %v1396_v27, %v3376_v33  ;;  %v1404_v27 = vld [vmem:[%s3881_s7 + $0x48] sm:$0xff] }
 0x27e   : > { %1457 = vrot.lane.b32.xlu1 %v1426_v57, %s2707_s1  ;;  %1505 = vrot.lane.b32.xlu0 %v1480_v1, %s2707_s1 }
 0x27f   : > { %2477 = vmatmul.msk.f32.gmra.mxu3 %vm1662_vm13, %v1655_v12 }
 0x283   : > { %v3384_v6 = vpop.f32.mrf.mxu0 }
 0x284   : > { %v1481_v25 = vmul.f32 %v1448_v17, %v3384_v6 }
 0x286   : > { %1459 = vrot.lane.b32.xlu1 %v1427_v10, %s2707_s1  ;;  %1507 = vrot.lane.b32.xlu0 %v1481_v25, %s2707_s1  ;;  %v1397_v10 = vld [vmem:[%s3881_s7 + $0x10] sm:$0xff] }
 0x287   : > { %2478 = vmatmul.msk.f32.gmra.mxu3 %vm1662_vm13, %v1656_v37  ;;  %v1409_v12 = vmul.f32 %v1397_v10, %v3384_v6 }
 0x28b   : > { %v3396_v8 = vpop.f32.mrf.mxu0 }
 0x28c   : > { %v1482_v35 = vmul.f32 %v1450_v34, %v3396_v8 }
 0x28e   : > { %1461 = vrot.lane.b32.xlu1 %v1428_v30, %s2707_s1  ;;  %1509 = vrot.lane.b32.xlu0 %v1482_v35, %s2707_s1 }
 0x28f   : > { %2479 = vmatmul.msk.f32.gmra.mxu3 %vm1662_vm13, %v1657_v51 }
 0x293   : > { %v1057_v0 = vpop.xlane.xlu2 %1056  ;;  %v3408_v40 = vpop.f32.mrf.mxu0 }
 0x294   : > { %v1076_v45 = vmul.f32 %v2947_v42, %v1057_v0  ;;  %v1483_v50 = vmul.f32 %v1452_v58, %v3408_v40  ;;  %v1398_v58 = vld [vmem:[%s3881_s7 + $0x18] sm:$0xff] }
 0x296   : > { %v1088_v48 = vadd.f32 1e-05, %v1076_v45  ;;  %1463 = vrot.lane.b32.xlu0 %v1429_v23, %s2707_s1  ;;  %1511 = vrot.lane.b32.xlu2 %v1483_v50, %s2707_s1  ;;  %v1410_v45 = vmul.f32 %v1398_v58, %v3396_v8 }
 0x297   : > { %2480 = vmatmul.msk.f32.gmra.mxu3 %vm1662_vm13, %v1658_v55 }
 0x298   : > { %2655 = vrsqrt.f32 %v1088_v48  ;;  %vm1205_vm1 = vweird.f32 %v1088_v48 }
 0x29b   : > { %v1456_v46 = vpop.permute.xlu2 %1455 }
 0x29e   : > { %v2656_v47 = vpop.eup %2655  ;;  %1465 = vrot.lane.b32.xlu2 %v1430_v31, %s2707_s1  ;;  %v1400_v31 = vld [vmem:[%s3881_s7 + $0x28] sm:$0xff] }
 0x29f   : > { %v1200_v38 = vmul.f32 %v2656_v47, %v1088_v48  ;;  %vm1206_vm0 = vweird.f32 %v2656_v47  ;;  %2481 = vmatmul.msk.f32.gmra.mxu3 %vm1662_vm13, %v1659_v19  ;;  %v1402_v19 = vld [vmem:[%s3881_s7 + $0x38] sm:$0xff] }
 0x2a0   : > { %vm1207_vm2 = vmor %vm1205_vm1, %vm1206_vm0 }
 0x2a1   : > { %v1201_v63 = vmul.f32 %v2656_v47, %v1200_v38 }
 0x2a3   : > { %v1202_v62 = vmul.f32 0.5, %v1201_v63  ;;  %v1399_v63 = vld [vmem:[%s3881_s7 + $0x20] sm:$0xff] }
 0x2a5   : > { %v1203_v49 = vsub.f32 1.5, %v1202_v62 }
 0x2a7   : > { %v1204_v39 = vmul.f32 %v2656_v47, %v1203_v49  ;;  %2482 = vmatmul.msk.f32.gmra.mxu3 %vm1662_vm13, %v1660_v11  ;;  %v1411_v49 = vmul.f32 %v1399_v63, %v3408_v40 }
 0x2a9   : > { %v1208_v44 = vsel %vm1207_vm2, %v2656_v47, %v1204_v39 }
 0x2aa   : > { %v1220_v2 = vmul.f32 %v1208_v44, %v3296_v52 }
 0x2ac   : > { %v1236_v53 = vmul.f32 %v3338_v61, %v1220_v2  ;;  %v1770_v61 = vld [vmem:[%s3883_s9 + $0x30] sm:$0xff] }
 0x2ad   : > { %1817 = vmatpush.msrb.mxu2 %v1770_v61  ;;  %v1401_v61 = vld [vmem:[%s3881_s7 + $0x30] sm:$0xff] }
 0x2ae   : > { %2457 = vmatmul.msk.f32.gmra.mxu0 %vm1021_vm4, %v1236_v53  ;;  %2469 = vmatmul.msk.f32.gmra.mxu1 %vm1021_vm4, %v1236_v53 }
 0x2af   : > { %1818 = vmatpush.msrb.mxu2 %v1769_v56  ;;  %2483 = vmatmul.msk.f32.gmra.mxu3 %vm1662_vm13, %v1661_v5  ;;  %v1403_v5 = vld [vmem:[%s3881_s7 + $0x40] sm:$0xff] }
 0x2b1   : > { %1819 = vmatpush.msrb.mxu2 %v1768_v18 }
 0x2b3   : > { %1820 = vmatpush.msrb.mxu2 %v1767_v43 }
 0x2b5   : > { %1821 = vmatpush.msrb.mxu2 %v1766_v41 }
 0x2b6   : > { %v3433_v52 = vpop.f32.mrf.mxu0 }
 0x2b7   : > { %v1484_v32 = vmul.f32 %v1454_v59, %v3433_v52  ;;  %1822 = vmatpush.msrb.mxu2 %v1765_v9 }
 0x2b9   : > { %1513 = vrot.lane.b32.xlu1 %v1484_v32, %s2707_s1  ;;  %1823 = vmatpush.msrb.mxu2 %v1764_v13  ;;  %v1412_v32 = vmul.f32 %v1400_v31, %v3433_v52 }
 0x2be   : > { %v3437_v54 = vpop.f32.mrf.mxu0 }
 0x2bf   : > { %v1485_v60 = vmul.f32 %v1456_v46, %v3437_v54  ;;  %v1413_v18 = vmul.f32 %v1401_v61, %v3437_v54 }
 0x2c1   : > { %1515 = vrot.lane.b32.xlu0 %v1485_v60, %s2707_s1 }
 0x2c6   : > { %v3481_v22 = vpop.f32.mrf.mxu0 }
 0x2c7   : > { %v1414_v11 = vmul.f32 %v1402_v19, %v3481_v22 }
 0x2ce   : > { %v1330_v26 = vpop.f32.mrf.mxu0 }
 0x2d6   : > { %v1333_v0 = vpop.f32.mrf.mxu0 }
 0x2da   : > { %v1716_v20 = vpop.f32.mrf.mxu3 }
 0x2de   : > { %v1336_v39 = vpop.f32.mrf.mxu0 }
 0x2e2   : > { %v1719_v14 = vpop.f32.mrf.mxu3 }
 0x2e8   : > { %v1504_v7 = vpop.permute.xlu1 %1503 }
 0x2e9   : > { %v1539_v24 = vadd.f32 %v1504_v7, %v1407_v3  ;;  %v1415_v7 = vmul.f32 %v1403_v5, %v1330_v26 }
 0x2ea   : > { %v1722_v25 = vpop.f32.mrf.mxu3 }
 0x2eb   : > { %v1752_v36 = vmul.f32 %v1716_v20, %v1539_v24 }
 0x2ed   : > { %2484 = vmatmul.msk.f32.vlgmr.msrb.gmra.mxu2 %vm1021_vm4, %v1752_v36 }
 0x2f0   : > { %v1506_v16 = vpop.permute.xlu0 %1505  ;;  %v1458_v57 = vpop.permute.xlu1 %1457 }
 0x2f1   : > { %v1540_v29 = vadd.f32 %v1506_v16, %v1408_v28  ;;  %v1486_v1 = vmul.f32 %v1458_v57, %v3481_v22  ;;  %v1512_v62 = vpop.permute.xlu2 %1511  ;;  %v1416_v28 = vmul.f32 %v1404_v27, %v1333_v0  ;;  %v1405_v57 = vld [vmem:[%s3881_s7 + $0x50] sm:$0xff] }
 0x2f2   : > { %v1725_v23 = vpop.f32.mrf.mxu3  ;;  %v1543_v8 = vadd.f32 %v1512_v62, %v1411_v49 }
 0x2f3   : > { %v1753_v17 = vmul.f32 %v1719_v14, %v1540_v29  ;;  %1517 = vrot.lane.b32.xlu1 %v1486_v1, %s2707_s1 }
 0x2f5   : > { %2485 = vmatmul.msk.f32.gmra.mxu2 %vm1021_vm4, %v1753_v17 }
 0x2f8   : > { %v1508_v34 = vpop.permute.xlu0 %1507  ;;  %v1460_v30 = vpop.permute.xlu1 %1459 }
 0x2f9   : > { %v1541_v33 = vadd.f32 %v1508_v34, %v1409_v12  ;;  %v1487_v35 = vmul.f32 %v1460_v30, %v1330_v26  ;;  %v1466_v55 = vpop.permute.xlu2 %1465  ;;  %v1417_v26 = vmul.f32 %v1405_v57, %v1336_v39  ;;  %v1406_v34 = vld [vmem:[%s3881_s7 + $0x58] sm:$0xff] }
 0x2fa   : > { %v1728_v51 = vpop.f32.mrf.mxu3 }
 0x2fb   : > { %v1754_v37 = vmul.f32 %v1722_v25, %v1541_v33  ;;  %1519 = vrot.lane.b32.xlu2 %v1487_v35, %s2707_s1  ;;  %v1756_v53 = vmul.f32 %v1728_v51, %v1543_v8 }
 0x2fd   : > { %2486 = vmatmul.msk.f32.gmra.mxu2 %vm1021_vm4, %v1754_v37 }
 0x300   : > { %v1510_v50 = vpop.permute.xlu0 %1509  ;;  %v1462_v6 = vpop.permute.xlu1 %1461 }
 0x301   : > { %v1542_v48 = vadd.f32 %v1510_v50, %v1410_v45  ;;  %v1488_v47 = vmul.f32 %v1462_v6, %v1333_v0  ;;  %v3547_v50 = vpop.f32.mrf.mxu1 }
 0x302   : > { %v1731_v59 = vpop.f32.mrf.mxu3 }
 0x303   : > { %v1755_v38 = vmul.f32 %v1725_v23, %v1542_v48  ;;  %1521 = vrot.lane.b32.xlu0 %v1488_v47, %s2707_s1 }
 0x305   : > { %2487 = vmatmul.msk.f32.gmra.mxu2 %vm1021_vm4, %v1755_v38 }
 0x308   : > { %v1464_v44 = vpop.permute.xlu0 %1463 }
 0x309   : > { %v1489_v2 = vmul.f32 %v1464_v44, %v1336_v39  ;;  %v3551_v6 = vpop.f32.mrf.mxu1 }
 0x30a   : > { %v1734_v41 = vpop.f32.mrf.mxu3 }
 0x30b   : > { %1523 = vrot.lane.b32.xlu1 %v1489_v2, %s2707_s1 }
 0x30d   : > { %2488 = vmatmul.msk.f32.gmra.mxu2 %vm1021_vm4, %v1756_v53 }
 0x311   : > { %v3555_v38 = vpop.f32.mrf.mxu1 }
 0x312   : > { %v1737_v52 = vpop.f32.mrf.mxu3 }
 0x319   : > { %v3559_v62 = vpop.f32.mrf.mxu1 }
 0x31a   : > { %v1740_v24 = vpop.f32.mrf.mxu3 }
 0x321   : > { %v3561_v39 = vpop.f32.mrf.mxu1 }
 0x322   : > { %v1743_v22 = vpop.f32.mrf.mxu3 }
 0x329   : > { %v3563_v44 = vpop.f32.mrf.mxu1 }
 0x32a   : > { %v1746_v10 = vpop.f32.mrf.mxu3 }
 0x32b   : > { %v1339_v46 = vpop.f32.mrf.mxu0  ;;  %v1514_v60 = vpop.permute.xlu1 %1513 }
 0x32c   : > { %v1490_v40 = vmul.f32 %v1466_v55, %v1339_v46  ;;  %v1544_v4 = vadd.f32 %v1514_v60, %v1412_v32  ;;  %v1418_v33 = vmul.f32 %v1406_v34, %v1339_v46 }
 0x32e   : > { %1525 = vrot.lane.b32.xlu2 %v1490_v40, %s2707_s1  ;;  %v1757_v56 = vmul.f32 %v1731_v59, %v1544_v4 }
 0x330   : > { %2489 = vmatmul.msk.f32.gmra.mxu2 %vm1021_vm4, %v1757_v56 }
 0x331   : > { %v3565_v2 = vpop.f32.mrf.mxu1 }
 0x332   : > { %v1749_v35 = vpop.f32.mrf.mxu3 }
 0x333   : > { %v1516_v43 = vpop.permute.xlu0 %1515 }
 0x334   : > { %v1545_v9 = vadd.f32 %v1516_v43, %v1413_v18 }
 0x336   : > { %v1758_v13 = vmul.f32 %v1734_v41, %v1545_v9 }
 0x338   : > { %2490 = vmatmul.msk.f32.gmra.mxu2 %vm1021_vm4, %v1758_v13 }
 0x339   : > { %v3567_v31 = vpop.f32.mrf.mxu1 }
 0x341   : > { %v1383_v5 = vpop.f32.mrf.mxu1 }
 0x355   : > { %v1520_v3 = vpop.permute.xlu2 %1519 }
 0x356   : > { %v1547_v14 = vadd.f32 %v1520_v3, %v1415_v7 }
 0x358   : > { %v1760_v36 = vmul.f32 %v1740_v24, %v1547_v14 }
 0x365   : > { %v1518_v20 = vpop.permute.xlu1 %1517 }
 0x366   : > { %v1546_v21 = vadd.f32 %v1518_v20, %v1414_v11 }
 0x368   : > { %v1759_v54 = vmul.f32 %v1737_v52, %v1546_v21 }
 0x36a   : > { %2491 = vmatmul.msk.f32.gmra.mxu2 %vm1021_vm4, %v1759_v54 }
 0x370   : > { %v3541_v0 = vpop.f32.mrf.mxu2 }
 0x371   : > { %v1861_v61 = vsel %vm1021_vm4, %v3541_v0, -inf }
 0x372   : > { %2492 = vmatmul.msk.f32.gmra.mxu2 %vm1021_vm4, %v1760_v36 }
 0x375   : > { %v1522_v16 = vpop.permute.xlu0 %1521 }
 0x376   : > { %v1548_v29 = vadd.f32 %v1522_v16, %v1416_v28  ;;  %v1386_v28 = vpop.f32.mrf.mxu1 }
 0x378   : > { %v1761_v1 = vmul.f32 %v1743_v22, %v1548_v29  ;;  %v3543_v23 = vpop.f32.mrf.mxu2 }
 0x379   : > { %v1862_v32 = vsel %vm1021_vm4, %v3543_v23, -inf }
 0x37a   : > { %2493 = vmatmul.msk.f32.gmra.mxu2 %vm1021_vm4, %v1761_v1 }
 0x37d   : > { %v1524_v17 = vpop.permute.xlu1 %1523 }
 0x37e   : > { %v1549_v25 = vadd.f32 %v1524_v17, %v1417_v26 }
 0x380   : > { %v1762_v12 = vmul.f32 %v1746_v10, %v1549_v25  ;;  %v3545_v45 = vpop.f32.mrf.mxu2 }
 0x381   : > { %v1863_v18 = vsel %vm1021_vm4, %v3545_v45, -inf }
 0x382   : > { %2494 = vmatmul.msk.f32.gmra.mxu2 %vm1021_vm4, %v1762_v12 }
 0x388   : > { %v1526_v30 = vpop.permute.xlu2 %1525  ;;  %v3549_v48 = vpop.f32.mrf.mxu2 }
 0x389   : > { %v1550_v37 = vadd.f32 %v1526_v30, %v1418_v33  ;;  %v1864_v43 = vsel %vm1021_vm4, %v3549_v48, -inf  ;;  %v1389_v33 = vpop.f32.mrf.mxu1 }
 0x38b   : > { %v1763_v58 = vmul.f32 %v1749_v35, %v1550_v37 }
 0x38d   : > { %2495 = vmatmul.msk.f32.gmra.mxu2 %vm1021_vm4, %v1763_v58 }
 0x390   : > { %v3553_v47 = vpop.f32.mrf.mxu2 }
 0x391   : > { %v1865_v46 = vsel %vm1021_vm4, %v3553_v47, -inf }
 0x392   : > { %v1866_v13 = vmax.f32 %v1861_v61, %v1865_v46  ;;  %v1392_v61 = vpop.f32.mrf.mxu1 }
 0x3b3   : > { %v3557_v63 = vpop.f32.mrf.mxu2 }
 0x3b4   : > { %v1867_v59 = vsel %vm1021_vm4, %v3557_v63, -inf }
 0x3b5   : > { %v1868_v56 = vmax.f32 %v1862_v32, %v1867_v59 }
 0x3bb   : > { %v1843_v49 = vpop.f32.mrf.mxu2 }
 0x3bc   : > { %v1869_v40 = vsel %vm1021_vm4, %v1843_v49, -inf }
 0x3bd   : > { %v1870_v52 = vmax.f32 %v1863_v18, %v1869_v40 }
 0x3ed   : > { %v1846_v51 = vpop.f32.mrf.mxu2 }
 0x3ee   : > { %v1871_v60 = vsel %vm1021_vm4, %v1846_v51, -inf }
 0x3ef   : > { %v1872_v19 = vmax.f32 %v1864_v43, %v1871_v60 }
 0x3f5   : > { %v1849_v8 = vpop.f32.mrf.mxu2 }
 0x3f6   : > { %v1873_v41 = vsel %vm1021_vm4, %v1849_v8, -inf }
 0x3f7   : > { %v1874_v54 = vmax.f32 %v1866_v13, %v1873_v41 }
 0x3fd   : > { %v1852_v53 = vpop.f32.mrf.mxu2 }
 0x3fe   : > { %v1875_v4 = vsel %vm1021_vm4, %v1852_v53, -inf }
 0x3ff   : > { %v1876_v11 = vmax.f32 %v1868_v56, %v1875_v4 }
 0x401   : > { %v1881_v24 = vmax.f32 %v1874_v54, %v1876_v11 }
 0x405   : > { %v1855_v55 = vpop.f32.mrf.mxu2 }
 0x406   : > { %v1877_v9 = vsel %vm1021_vm4, %v1855_v55, -inf }
 0x407   : > { %v1878_v3 = vmax.f32 %v1870_v52, %v1877_v9 }
 0x410   : > { %v1858_v20 = vpop.f32.mrf.mxu2 }
 0x411   : > { %v1879_v21 = vsel %vm1021_vm4, %v1858_v20, -inf }
 0x412   : > { %v1880_v7 = vmax.f32 %v1872_v19, %v1879_v21 }
 0x414   : > { %v1882_v14 = vmax.f32 %v1878_v3, %v1880_v7 }
 0x416   : > { %v1883_v36 = vmax.f32 %v1881_v24, %v1882_v14 }
 0x418   : > { %v1884_v27 = vrot.slane %v1883_v36, 4 }
 0x41a   : > { %v1885_v22 = vmax.f32 %v1883_v36, %v1884_v27 }
 0x41c   : > { %v1886_v16 = vrot.slane %v1885_v22, 2 }
 0x41e   : > { %v1887_v29 = vmax.f32 %v1885_v22, %v1886_v16 }
 0x420   : > { %v1888_v57 = vrot.slane %v1887_v29, 1 }
 0x422   : > { %v1889_v1 = vmax.f32 %v1887_v29, %v1888_v57 }
 0x424   : > { %v1901_v26 = vsub.f32 %v1858_v20, %v1889_v1  ;;  %v1900_v17 = vsub.f32 %v1855_v55, %v1889_v1  ;;  %v1898_v10 = vsub.f32 %v1849_v8, %v1889_v1  ;;  %v1899_v25 = vsub.f32 %v1852_v53, %v1889_v1 }
 0x425   : > { %v1896_v12 = vsub.f32 %v1843_v49, %v1889_v1  ;;  %v1897_v34 = vsub.f32 %v1846_v51, %v1889_v1  ;;  %v1894_v58 = vsub.f32 %v3553_v47, %v1889_v1  ;;  %v1895_v32 = vsub.f32 %v3557_v63, %v1889_v1 }
 0x426   : > { %v1924_v30 = vmul.f32 1.442695, %v1901_v26  ;;  %v1922_v35 = vmul.f32 1.442695, %v1900_v17  ;;  %v1918_v37 = vmul.f32 1.442695, %v1898_v10  ;;  %v1892_v40 = vsub.f32 %v3545_v45, %v1889_v1 }
 0x427   : > { %v1920_v59 = vmul.f32 1.442695, %v1899_v25  ;;  %v1914_v46 = vmul.f32 1.442695, %v1896_v12  ;;  %v1916_v60 = vmul.f32 1.442695, %v1897_v34  ;;  %v1893_v8 = vsub.f32 %v3549_v48, %v1889_v1 }
 0x428   : > { %2657 = vpow2.f32 %v1924_v30  ;;  %v1910_v49 = vmul.f32 1.442695, %v1894_v58  ;;  %v1890_v51 = vsub.f32 %v3541_v0, %v1889_v1  ;;  %v1912_v53 = vmul.f32 1.442695, %v1895_v32 }
 0x429   : > { %2659 = vpow2.f32 %v1922_v35  ;;  %v1891_v55 = vsub.f32 %v3543_v23, %v1889_v1  ;;  %v1906_v47 = vmul.f32 1.442695, %v1892_v40  ;;  %v1908_v63 = vmul.f32 1.442695, %v1893_v8 }
 0x42a   : > { %2661 = vpow2.f32 %v1918_v37  ;;  %v1902_v45 = vmul.f32 1.442695, %v1890_v51 }
 0x42b   : > { %2663 = vpow2.f32 %v1920_v59  ;;  %v1904_v48 = vmul.f32 1.442695, %v1891_v55 }
 0x42c   : > { %2665 = vpow2.f32 %v1914_v46 }
 0x42d   : > { %2667 = vpow2.f32 %v1916_v60 }
 0x42e   : > { %v2658_v4 = vpop.eup %2657  ;;  %2669 = vpow2.f32 %v1910_v49 }
 0x42f   : > { %v2660_v56 = vpop.eup %2659  ;;  %v1937_v18 = vmul.f32 %v2658_v4, %v1392_v61  ;;  %2671 = vpow2.f32 %v1912_v53 }
 0x430   : > { %v2662_v43 = vpop.eup %2661  ;;  %v1936_v41 = vmul.f32 %v2660_v56, %v1389_v33  ;;  %2673 = vpow2.f32 %v1906_v47 }
 0x431   : > { %v2664_v0 = vpop.eup %2663  ;;  %v1934_v9 = vmul.f32 %v2662_v43, %v1383_v5  ;;  %2675 = vpow2.f32 %v1908_v63 }
 0x432   : > { %v2666_v13 = vpop.eup %2665  ;;  %v2537_v23 = vpack.i.bf16 %v1936_v41, %v1937_v18  ;;  %v1935_v52 = vmul.f32 %v2664_v0, %v1386_v28  ;;  %2677 = vpow2.f32 %v1902_v45  ;;  %v2050_v18 = vld [vmem:[%s3886_s12 + $0x38] sm:$0xff]  ;;  %v2047_v41 = vld [vmem:[%s3886_s12 + $0x20] sm:$0xff] }
 0x433   : > { %v2668_v19 = vpop.eup %2667  ;;  %v1932_v11 = vmul.f32 %v2666_v13, %v3565_v2  ;;  %2679 = vpow2.f32 %v1904_v48  ;;  %v2049_v48 = vld [vmem:[%s3886_s12 + $0x30] sm:$0xff] }
 0x434   : > { %v2670_v20 = vpop.eup %2669  ;;  %2538 = vrot.lane.b32.xlu0 %v2537_v23, %s2707_s1  ;;  %v2542_v21 = vpack.i.bf16 %v1934_v9, %v1935_v52  ;;  %v1933_v54 = vmul.f32 %v2668_v19, %v3567_v31  ;;  %v2045_v9 = vld [vmem:[%s3886_s12 + $0x10] sm:$0xff]  ;;  %v2043_v52 = vld [vmem:[%s3886_s12] sm:$0xff] }
 0x435   : > { %v2672_v3 = vpop.eup %2671  ;;  %v1930_v24 = vmul.f32 %v2670_v20, %v3561_v39 }
 0x436   : > { %v2674_v7 = vpop.eup %2673  ;;  %2543 = vrot.lane.b32.xlu1 %v2542_v21, %s2707_s1  ;;  %v2547_v5 = vpack.i.bf16 %v1932_v11, %v1933_v54  ;;  %v1931_v14 = vmul.f32 %v2672_v3, %v3563_v44 }
 0x437   : > { %v2676_v36 = vpop.eup %2675  ;;  %v1928_v2 = vmul.f32 %v2674_v7, %v3555_v38 }
 0x438   : > { %v2678_v27 = vpop.eup %2677  ;;  %2548 = vrot.lane.b32.xlu2 %v2547_v5, %s2707_s1  ;;  %v1929_v22 = vmul.f32 %v2676_v36, %v3559_v62  ;;  %v2552_v16 = vpack.i.bf16 %v1930_v24, %v1931_v14 }
 0x439   : > { %v2680_v28 = vpop.eup %2679  ;;  %v1926_v31 = vmul.f32 %v2678_v27, %v3547_v50 }
 0x43a   : > { %v1927_v29 = vmul.f32 %v2680_v28, %v3551_v6  ;;  %v2557_v57 = vpack.i.bf16 %v1928_v2, %v1929_v22 }
 0x43c   : > { %2553 = vrot.lane.b32.xlu0 %v2552_v16, %s2707_s1  ;;  %v2562_v39 = vpack.i.bf16 %v1926_v31, %v1927_v29  ;;  %v2127_v31 = vld [vmem:[%s3888_s14 + $0xe0] sm:$0xff] }
 0x43d   : > { %2142 = vmatpush.msrb.mxu1 %v2127_v31  ;;  %v2123_v29 = vld [vmem:[%s3888_s14 + $0xc0] sm:$0xff]  ;;  %v2261_v31 = vld [vmem:[%s3889_s15 + $0x28] sm:$0xff] }
 0x43e   : > { %2558 = vrot.lane.b32.xlu1 %v2557_v57, %s2707_s1  ;;  %v2115_v57 = vld [vmem:[%s3888_s14 + $0x80] sm:$0xff] }
 0x43f   : > { %2143 = vmatpush.msrb.mxu1 %v2123_v29  ;;  %v2280_v29 = vld [vmem:[%s3889_s15 + $0xc0] sm:$0xff] }
 0x440   : > { %2563 = vrot.lane.b32.xlu2 %v2562_v39, %s2707_s1  ;;  %v2128_v39 = vld [vmem:[%s3888_s14 + $0xe8] sm:$0xff] }
 0x441   : > { %2162 = vmatpush.msrb.mxu3 %v2128_v39  ;;  %v2260_v39 = vld [vmem:[%s3889_s15 + $0x20] sm:$0xff] }
 0x492   : > { %v2549_v10 = vpop.permute.xlu2 %2548 }
 0x493   : > { %v2550_v25 = vunpack.i.l.bf16 %v2549_v10  ;;  %v2551_v33 = vunpack.i.h.bf16 %v2549_v10  ;;  %v2121_v10 = vld [vmem:[%s3888_s14 + $0xb0] sm:$0xff] }
 0x495   : > { %v1993_v37 = vsel %vm1021_vm4, %v2668_v19, %v2550_v25  ;;  %v1992_v32 = vsel %vm1021_vm4, %v2666_v13, %v2551_v33  ;;  %v2044_v13 = vld [vmem:[%s3886_s12 + $0x8] sm:$0xff]  ;;  %v2117_v25 = vld [vmem:[%s3888_s14 + $0x90] sm:$0xff] }
 0x496   : > { %v2113_v33 = vld [vmem:[%s3888_s14 + $0x70] sm:$0xff] }
 0x49a   : > { %v2564_v60 = vpop.permute.xlu2 %2563 }
 0x49b   : > { %v2565_v51 = vunpack.i.l.bf16 %v2564_v60  ;;  %v2566_v55 = vunpack.i.h.bf16 %v2564_v60 }
 0x49d   : > { %v1987_v63 = vsel %vm1021_vm4, %v2680_v28, %v2565_v51  ;;  %v1986_v61 = vsel %vm1021_vm4, %v2678_v27, %v2566_v55  ;;  %v2118_v51 = vld [vmem:[%s3888_s14 + $0x98] sm:$0xff] }
 0x49e   : > { %v2114_v55 = vld [vmem:[%s3888_s14 + $0x78] sm:$0xff] }
 0x4a6   : > { %v2539_v44 = vpop.permute.xlu0 %2538 }
 0x4a7   : > { %v2541_v1 = vunpack.i.h.bf16 %v2539_v44  ;;  %v2540_v26 = vunpack.i.l.bf16 %v2539_v44  ;;  %v2129_v44 = vld [vmem:[%s3888_s14 + $0xf0] sm:$0xff] }
 0x4a8   : > { %v2544_v38 = vpop.permute.xlu1 %2543 }
 0x4a9   : > { %v2545_v17 = vunpack.i.l.bf16 %v2544_v38  ;;  %v1997_v62 = vsel %vm1021_vm4, %v2658_v4, %v2540_v26  ;;  %v2546_v50 = vunpack.i.h.bf16 %v2544_v38  ;;  %v1996_v6 = vsel %vm1021_vm4, %v2660_v56, %v2541_v1  ;;  %v1998_v4 = vld [vmem:[%s3885_s11] sm:$0xff]  ;;  %v2124_v26 = vld [vmem:[%s3888_s14 + $0xc8] sm:$0xff]  ;;  %v2125_v38 = vld [vmem:[%s3888_s14 + $0xd0] sm:$0xff] }
 0x4aa   : > { %2007 = vmatpush.msrb.mxu0 %v1997_v62  ;;  %v2111_v1 = vld [vmem:[%s3888_s14 + $0x60] sm:$0xff]  ;;  %v2120_v62 = vld [vmem:[%s3888_s14 + $0xa8] sm:$0xff]  ;;  %2163 = vmatpush.msrb.mxu3 %v2124_v26  ;;  %v2278_v26 = vld [vmem:[%s3889_s15 + $0xb0] sm:$0xff] }
 0x4ab   : > { %v1995_v12 = vsel %vm1021_vm4, %v2664_v0, %v2545_v17  ;;  %v1994_v30 = vsel %vm1021_vm4, %v2662_v43, %v2546_v50  ;;  %v2048_v43 = vld [vmem:[%s3886_s12 + $0x28] sm:$0xff]  ;;  %v2046_v0 = vld [vmem:[%s3886_s12 + $0x18] sm:$0xff]  ;;  %v2107_v17 = vld [vmem:[%s3888_s14 + $0x40] sm:$0xff] }
 0x4ac   : > { %2008 = vmatpush.msrb.mxu0 %v1996_v6  ;;  %v2103_v50 = vld [vmem:[%s3888_s14 + $0x20] sm:$0xff]  ;;  %v2116_v6 = vld [vmem:[%s3888_s14 + $0x88] sm:$0xff]  ;;  %2164 = vmatpush.msrb.mxu3 %v2120_v62 }
 0x4ad   : > { %v2257_v62 = vld [vmem:[%s3889_s15 + $0x8] sm:$0xff] }
 0x4ae   : > { %2009 = vmatpush.msrb.mxu0 %v1995_v12  ;;  %v2554_v34 = vpop.permute.xlu0 %2553  ;;  %v2099_v12 = vld [vmem:[%s3888_s14] sm:$0xff]  ;;  %2165 = vmatpush.msrb.mxu3 %v2116_v6 }
 0x4af   : > { %v2555_v35 = vunpack.i.l.bf16 %v2554_v34  ;;  %v2556_v59 = vunpack.i.h.bf16 %v2554_v34  ;;  %v2112_v34 = vld [vmem:[%s3888_s14 + $0x68] sm:$0xff] }
 0x4b0   : > { %2010 = vmatpush.msrb.mxu0 %v1994_v30  ;;  %v2559_v58 = vpop.permute.xlu1 %2558  ;;  %v2130_v30 = vld [vmem:[%s3888_s14 + $0xf8] sm:$0xff]  ;;  %2166 = vmatpush.msrb.mxu3 %v2112_v34 }
 0x4b1   : > { %v2560_v46 = vunpack.i.l.bf16 %v2559_v58  ;;  %v1991_v40 = vsel %vm1021_vm4, %v2672_v3, %v2555_v35  ;;  %v2561_v8 = vunpack.i.h.bf16 %v2559_v58  ;;  %v1990_v49 = vsel %vm1021_vm4, %v2670_v20, %v2556_v59  ;;  %v2108_v35 = vld [vmem:[%s3888_s14 + $0x48] sm:$0xff]  ;;  %v2126_v58 = vld [vmem:[%s3888_s14 + $0xd8] sm:$0xff] }
 0x4b2   : > { %2011 = vmatpush.msrb.mxu0 %v1993_v37  ;;  %v2109_v37 = vld [vmem:[%s3888_s14 + $0x50] sm:$0xff]  ;;  %v2104_v59 = vld [vmem:[%s3888_s14 + $0x28] sm:$0xff]  ;;  %2167 = vmatpush.msrb.mxu3 %v2108_v35 }
 0x4b3   : > { %v1989_v53 = vsel %vm1021_vm4, %v2676_v36, %v2560_v46  ;;  %v1988_v47 = vsel %vm1021_vm4, %v2674_v7, %v2561_v8  ;;  %v2100_v8 = vld [vmem:[%s3888_s14 + $0x8] sm:$0xff] }
 0x4b4   : > { %2012 = vmatpush.msrb.mxu0 %v1992_v32  ;;  %v2105_v32 = vld [vmem:[%s3888_s14 + $0x30] sm:$0xff]  ;;  %2168 = vmatpush.msrb.mxu3 %v2104_v59  ;;  %v2273_v35 = vld [vmem:[%s3889_s15 + $0x88] sm:$0xff] }
 0x4b6   : > { %2013 = vmatpush.msrb.mxu0 %v1991_v40  ;;  %v2122_v40 = vld [vmem:[%s3888_s14 + $0xb8] sm:$0xff]  ;;  %2169 = vmatpush.msrb.mxu3 %v2100_v8 }
 0x4b8   : > { %2014 = vmatpush.msrb.mxu0 %v1990_v49  ;;  %v2101_v49 = vld [vmem:[%s3888_s14 + $0x10] sm:$0xff] }
 0x4ba   : > { %2015 = vmatpush.msrb.mxu0 %v1989_v53 }
 0x4bc   : > { %2016 = vmatpush.msrb.mxu0 %v1988_v47  ;;  %v2110_v47 = vld [vmem:[%s3888_s14 + $0x58] sm:$0xff] }
 0x4be   : > { %2017 = vmatpush.msrb.mxu0 %v1987_v63  ;;  %v2106_v63 = vld [vmem:[%s3888_s14 + $0x38] sm:$0xff] }
 0x4c0   : > { %2018 = vmatpush.msrb.mxu0 %v1986_v61 }
 0x4c1   : > { %2496 = vmatmul.msk.f32.vlgmr.msrb.gmra.mxu0 %vm1999_vm3, %v1998_v4  ;;  %v2102_v4 = vld [vmem:[%s3888_s14 + $0x18] sm:$0xff] }
 0x4c2   : > { %2064 = vmatpush.msra.mxu0 %v2050_v18 }
 0x4c4   : > { %2065 = vmatpush.msra.mxu0 %v2049_v48 }
 0x4c6   : > { %2066 = vmatpush.msra.mxu0 %v2048_v43 }
 0x4c8   : > { %2067 = vmatpush.msra.mxu0 %v2047_v41  ;;  %v2574_v41 = vld [vmem:[%s3887_s13] ss:$0 sm:$0xff] }
 0x4ca   : > { %2068 = vmatpush.msra.mxu0 %v2046_v0 }
 0x4cc   : > { %2069 = vmatpush.msra.mxu0 %v2045_v9 }
 0x4ce   : > { %2070 = vmatpush.msra.mxu0 %v2044_v13 }
 0x4d0   : > { %2071 = vmatpush.msra.mxu0 %v2043_v52  ;;  %v2270_v52 = vld [vmem:[%s3889_s15 + $0x70] sm:$0xff] }
 0x4d2   : > { %2182 = vmatpush.msrb.mxu0 %v2129_v44  ;;  %v2279_v44 = vld [vmem:[%s3889_s15 + $0xb8] sm:$0xff] }
 0x4d4   : > { %2183 = vmatpush.msrb.mxu0 %v2125_v38  ;;  %v2258_v38 = vld [vmem:[%s3889_s15 + $0x10] sm:$0xff] }
 0x4d6   : > { %2184 = vmatpush.msrb.mxu0 %v2121_v10 }
 0x4d8   : > { %2185 = vmatpush.msrb.mxu0 %v2117_v25  ;;  %v2256_v25 = vld [vmem:[%s3889_s15] sm:$0xff] }
 0x4da   : > { %2186 = vmatpush.msrb.mxu0 %v2113_v33  ;;  %v2274_v33 = vld [vmem:[%s3889_s15 + $0x90] sm:$0xff] }
 0x4dc   : > { %2187 = vmatpush.msrb.mxu0 %v2109_v37  ;;  %v2272_v37 = vld [vmem:[%s3889_s15 + $0x80] sm:$0xff] }
 0x4de   : > { %2188 = vmatpush.msrb.mxu0 %v2105_v32 }
 0x4e0   : > { %2189 = vmatpush.msrb.mxu0 %v2101_v49 }
 0x53e   : > { %v2020_v45 = vpop.f32.mrf.mxu0 }
 0x53f   : > { %v2023_v56 = vmax.f32 %v2020_v45, 1e-30 }
 0x541   : > { %2025 = vrot.lane.b32.xlu0 %v2023_v56, %s2707_s1 }
 0x5b3   : > { %v2026_v23 = vpop.permute.xlu0 %2025 }
 0x5b4   : > { %2681 = vrcp.f32 %v2026_v23  ;;  %v2039_v21 = vand.u32 2147483648, %v2026_v23  ;;  %v2037_v3 = vand.u32 2147483647, %v2026_v23  ;;  %vm2033_vm6 = vweird.f32 %v2026_v23 }
 0x5b6   : > { %v2040_v5 = vor.u32 1.1754944e-38, %v2039_v21  ;;  %vm2038_vm8 = vcmp.eq.f32.partialorder %v2037_v3, 8.507059e+37  ;;  %v2267_v21 = vld [vmem:[%s3889_s15 + $0x58] sm:$0xff]  ;;  %v2266_v3 = vld [vmem:[%s3889_s15 + $0x50] sm:$0xff] }
 0x5ba   : > { %v2682_v19 = vpop.eup %2681 }
 0x5bb   : > { %v2029_v11 = vmul.f32 %v2682_v19, %v2026_v23  ;;  %vm2034_vm5 = vweird.f32 %v2682_v19  ;;  %v2271_v23 = vld [vmem:[%s3889_s15 + $0x78] sm:$0xff] }
 0x5bc   : > { %vm2035_vm7 = vmor %vm2033_vm6, %vm2034_vm5  ;;  %2288 = vmatpush.msra.mxu2 %v2271_v23 }
 0x5bd   : > { %v2030_v20 = vsub.f32 1.0, %v2029_v11  ;;  %v2268_v11 = vld [vmem:[%s3889_s15 + $0x60] sm:$0xff] }
 0x5be   : > { %2289 = vmatpush.msra.mxu2 %v2270_v52 }
 0x5bf   : > { %v2031_v54 = vmul.f32 %v2682_v19, %v2030_v20  ;;  %v2287_v20 = vld [vmem:[%s3889_s15 + $0xf8] sm:$0xff] }
 0x5c0   : > { %2308 = vmatpush.msra.mxu3 %v2287_v20 }
 0x5c1   : > { %v2032_v7 = vadd.f32 %v2682_v19, %v2031_v54  ;;  %v2286_v54 = vld [vmem:[%s3889_s15 + $0xf0] sm:$0xff] }
 0x5c2   : > { %2309 = vmatpush.msra.mxu3 %v2286_v54 }
 0x5c3   : > { %v2036_v24 = vsel %vm2035_vm7, %v2682_v19, %v2032_v7  ;;  %v2269_v19 = vld [vmem:[%s3889_s15 + $0x68] sm:$0xff] }
 0x5c4   : > { %v2041_v14 = vsel %vm2038_vm8, %v2040_v5, %v2036_v24  ;;  %2290 = vmatpush.msra.mxu2 %v2269_v19  ;;  %v2285_v7 = vld [vmem:[%s3889_s15 + $0xe8] sm:$0xff]  ;;  %v2284_v24 = vld [vmem:[%s3889_s15 + $0xe0] sm:$0xff]  ;;  %vm2359_vm8 = vcmask 7168  }
 0x5c5   : > { %v2042_v36 = vmul.f32 %v2041_v14, %v2020_v45  ;;  %2310 = vmatpush.msra.mxu3 %v2285_v7  ;;  %v2265_v5 = vld [vmem:[%s3889_s15 + $0x48] sm:$0xff]  ;;  %v2264_v14 = vld [vmem:[%s3889_s15 + $0x40] sm:$0xff] }
 0x5c6   : > { %2291 = vmatpush.msra.mxu2 %v2268_v11 }
 0x5c7   : > { %2052 = vrot.lane.b32.xlu1 %v2042_v36, %s2707_s1  ;;  %2311 = vmatpush.msra.mxu3 %v2284_v24  ;;  %v2283_v36 = vld [vmem:[%s3889_s15 + $0xd8] sm:$0xff] }
 0x5c8   : > { %2292 = vmatpush.msra.mxu2 %v2267_v21 }
 0x5c9   : > { %2312 = vmatpush.msra.mxu3 %v2283_v36 }
 0x5ca   : > { %2293 = vmatpush.msra.mxu2 %v2266_v3 }
 0x5cc   : > { %2294 = vmatpush.msra.mxu2 %v2265_v5 }
 0x5ce   : > { %2295 = vmatpush.msra.mxu2 %v2264_v14 }
 0x639   : > { %v2053_v27 = vpop.permute.xlu1 %2052 }
 0x63a   : > { %2497 = vmatmul.msk.f32.vlgmr.msra.gmra.mxu0 %vm1021_vm4, %v2053_v27  ;;  %v2263_v27 = vld [vmem:[%s3889_s15 + $0x38] sm:$0xff] }
 0x63b   : > { %2296 = vmatpush.msra.mxu2 %v2263_v27 }
 0x6b7   : > { %v2073_v2 = vpop.f32.mrf.mxu0 }
 0x6b8   : > { %v3650_v22 = vadd.f32 %v2073_v2, %v2901_v15  ;;  %v2119_v15 = vld [vmem:[%s3888_s14 + $0xa0] sm:$0xff]  ;;  %v2282_v2 = vld [vmem:[%s3889_s15 + $0xd0] sm:$0xff] }
 0x6b9   : > { %2144 = vmatpush.msrb.mxu1 %v2119_v15  ;;  %2313 = vmatpush.msra.mxu3 %v2282_v2 }
 0x6ba   : > { %v2077_v28 = vmul.f32 %v3650_v22, %v3650_v22 }
 0x6bb   : > { %2145 = vmatpush.msrb.mxu1 %v2115_v57 }
 0x6bc   : > { %v2078_v16 = vsel %vm1021_vm4, %v2077_v28, 0.0  ;;  %v2262_v28 = vld [vmem:[%s3889_s15 + $0x30] sm:$0xff] }
 0x6bd   : > { %2079 = vadd.xlane.f32.xlu2 %v2078_v16  ;;  %2146 = vmatpush.msrb.mxu1 %v2111_v1  ;;  %v2281_v16 = vld [vmem:[%s3889_s15 + $0xc8] sm:$0xff]  ;;  %v2259_v1 = vld [vmem:[%s3889_s15 + $0x18] sm:$0xff] }
 0x6be   : > { %2297 = vmatpush.msra.mxu2 %v2262_v28  ;;  %2314 = vmatpush.msra.mxu3 %v2281_v16 }
 0x6bf   : > { %2147 = vmatpush.msrb.mxu1 %v2107_v17  ;;  %v2277_v17 = vld [vmem:[%s3889_s15 + $0xa8] sm:$0xff] }
 0x6c0   : > { %2298 = vmatpush.msra.mxu2 %v2261_v31  ;;  %2315 = vmatpush.msra.mxu3 %v2280_v29 }
 0x6c1   : > { %2148 = vmatpush.msrb.mxu1 %v2103_v50  ;;  %v2276_v50 = vld [vmem:[%s3889_s15 + $0xa0] sm:$0xff] }
 0x6c2   : > { %2299 = vmatpush.msra.mxu2 %v2260_v39  ;;  %2316 = vmatpush.msra.mxu3 %v2279_v44 }
 0x6c3   : > { %2149 = vmatpush.msrb.mxu1 %v2099_v12  ;;  %v2275_v12 = vld [vmem:[%s3889_s15 + $0x98] sm:$0xff] }
 0x6c4   : > { %2300 = vmatpush.msra.mxu2 %v2259_v1  ;;  %2317 = vmatpush.msra.mxu3 %v2278_v26 }
 0x6c5   : > { %2202 = vmatpush.msra.mxu1 %v2130_v30 }
 0x6c6   : > { %2301 = vmatpush.msra.mxu2 %v2258_v38  ;;  %2318 = vmatpush.msra.mxu3 %v2277_v17 }
 0x6c7   : > { %2203 = vmatpush.msra.mxu1 %v2126_v58 }
 0x6c8   : > { %2302 = vmatpush.msra.mxu2 %v2257_v62  ;;  %2319 = vmatpush.msra.mxu3 %v2276_v50 }
 0x6c9   : > { %2204 = vmatpush.msra.mxu1 %v2122_v40 }
 0x6ca   : > { %2303 = vmatpush.msra.mxu2 %v2256_v25  ;;  %2320 = vmatpush.msra.mxu3 %v2275_v12 }
 0x6cb   : > { %2205 = vmatpush.msra.mxu1 %v2118_v51 }
 0x6cc   : > { %2321 = vmatpush.msra.mxu3 %v2274_v33 }
 0x6cd   : > { %2206 = vmatpush.msra.mxu1 %v2114_v55 }
 0x6ce   : > { %2322 = vmatpush.msra.mxu3 %v2273_v35 }
 0x6cf   : > { %2207 = vmatpush.msra.mxu1 %v2110_v47 }
 0x6d0   : > { %2323 = vmatpush.msra.mxu3 %v2272_v37 }
 0x6d1   : > { %2208 = vmatpush.msra.mxu1 %v2106_v63 }
 0x6d3   : > { %2209 = vmatpush.msra.mxu1 %v2102_v4 }
 0x730   : > { %v2080_v46 = vpop.xlane.xlu2 %2079 }
 0x731   : > { %v2081_v60 = vmul.f32 %v2080_v46, %v2947_v42 }
 0x733   : > { %v2082_v53 = vadd.f32 1e-05, %v2081_v60 }
 0x735   : > { %2683 = vrsqrt.f32 %v2082_v53  ;;  %vm2089_vm10 = vweird.f32 %v2082_v53 }
 0x73b   : > { %v2684_v61 = vpop.eup %2683 }
 0x73c   : > { %v2084_v45 = vmul.f32 %v2684_v61, %v2082_v53  ;;  %vm2090_vm9 = vweird.f32 %v2684_v61 }
 0x73d   : > { %vm2091_vm11 = vmor %vm2089_vm10, %vm2090_vm9 }
 0x73e   : > { %v2085_v56 = vmul.f32 %v2684_v61, %v2084_v45 }
 0x740   : > { %v2086_v18 = vmul.f32 0.5, %v2085_v56 }
 0x742   : > { %v2087_v48 = vsub.f32 1.5, %v2086_v18 }
 0x744   : > { %v2088_v43 = vmul.f32 %v2684_v61, %v2087_v48 }
 0x746   : > { %v2092_v0 = vsel %vm2091_vm11, %v2684_v61, %v2088_v43 }
 0x747   : > { %v2093_v9 = vmul.f32 %v2092_v0, %v3650_v22 }
 0x749   : > { %v2098_v13 = vmul.f32 %v2574_v41, %v2093_v9 }
 0x74b   : > { %2498 = vmatmul.msk.f32.vlgmr.msrb.gmra.mxu1 %vm1021_vm4, %v2098_v13  ;;  %2499 = vmatmul.msk.f32.vlgmr.msrb.gmra.mxu3 %vm1021_vm4, %v2098_v13 }
 0x74c   : > { %2500 = vmatmul.msk.f32.vlgmr.msrb.gmra.mxu0 %vm1021_vm4, %v2098_v13 }
 0x753   : > { %2501 = vmatmul.msk.f32.vlgmr.msra.gmra.mxu1 %vm1021_vm4, %v2098_v13 }
 0x7c8   : > { %v2151_v15 = vpop.f32.mrf.mxu1 }
 0x7c9   : > { %v2502_v57 = vmul.f32 -1.442695, %v2151_v15  ;;  %v2191_v43 = vpop.f32.mrf.mxu0 }
 0x7cb   : > { %2685 = vpow2.f32 %v2502_v57 }
 0x7ce   : > { %v2171_v10 = vpop.f32.mrf.mxu3 }
 0x7cf   : > { %v2503_v6 = vmul.f32 -1.442695, %v2171_v10 }
 0x7d0   : > { %v2211_v19 = vpop.f32.mrf.mxu1 }
 0x7d1   : > { %v2686_v34 = vpop.eup %2685  ;;  %2687 = vpow2.f32 %v2503_v6 }
 0x7d2   : > { %v2220_v30 = vadd.f32 1.0, %v2686_v34 }
 0x7d4   : > { %2689 = vrcp.f32 %v2220_v30  ;;  %v2233_v60 = vand.u32 2147483648, %v2220_v30  ;;  %v2231_v49 = vand.u32 2147483647, %v2220_v30  ;;  %vm2227_vm13 = vweird.f32 %v2220_v30 }
 0x7d6   : > { %v2234_v47 = vor.u32 1.1754944e-38, %v2233_v60  ;;  %vm2232_vm15 = vcmp.eq.f32.partialorder %v2231_v49, 8.507059e+37 }
 0x7d7   : > { %v2688_v58 = vpop.eup %2687 }
 0x7d8   : > { %v2221_v59 = vadd.f32 1.0, %v2688_v58 }
 0x7da   : > { %v2690_v32 = vpop.eup %2689  ;;  %2691 = vrcp.f32 %v2221_v59  ;;  %v2248_v45 = vand.u32 2147483648, %v2221_v59  ;;  %v2246_v48 = vand.u32 2147483647, %v2221_v59  ;;  %vm2242_vm1 = vweird.f32 %v2221_v59 }
 0x7db   : > { %v2223_v46 = vmul.f32 %v2690_v32, %v2220_v30  ;;  %vm2228_vm12 = vweird.f32 %v2690_v32 }
 0x7dc   : > { %vm2229_vm14 = vmor %vm2227_vm13, %vm2228_vm12  ;;  %v2249_v9 = vor.u32 1.1754944e-38, %v2248_v45  ;;  %vm2247_vm3 = vcmp.eq.f32.partialorder %v2246_v48, 8.507059e+37 }
 0x7dd   : > { %v2224_v40 = vsub.f32 1.0, %v2223_v46 }
 0x7df   : > { %v2225_v8 = vmul.f32 %v2690_v32, %v2224_v40 }
 0x7e0   : > { %v2692_v51 = vpop.eup %2691 }
 0x7e1   : > { %v2226_v53 = vadd.f32 %v2690_v32, %v2225_v8  ;;  %v2238_v55 = vmul.f32 %v2692_v51, %v2221_v59  ;;  %vm2243_vm0 = vweird.f32 %v2692_v51 }
 0x7e2   : > { %vm2244_vm2 = vmor %vm2242_vm1, %vm2243_vm0 }
 0x7e3   : > { %v2230_v63 = vsel %vm2229_vm14, %v2690_v32, %v2226_v53  ;;  %v2239_v4 = vsub.f32 1.0, %v2238_v55 }
 0x7e4   : > { %v2235_v61 = vsel %vm2232_vm15, %v2234_v47, %v2230_v63 }
 0x7e5   : > { %v2252_v56 = vmul.f32 %v2235_v61, %v2151_v15  ;;  %v2240_v18 = vmul.f32 %v2692_v51, %v2239_v4 }
 0x7e7   : > { %v2254_v41 = vmul.f32 %v2252_v56, %v2191_v43  ;;  %v2241_v0 = vadd.f32 %v2692_v51, %v2240_v18 }
 0x7e9   : > { %v2245_v13 = vsel %vm2244_vm2, %v2692_v51, %v2241_v0  ;;  %2304 = vmatmul.f32.vlgmr.msra.gmra.mxu2 %v2254_v41 }
 0x7ea   : > { %v2250_v23 = vsel %vm2247_vm3, %v2249_v9, %v2245_v13 }
 0x7eb   : > { %v2253_v52 = vmul.f32 %v2250_v23, %v2171_v10 }
 0x7ed   : > { %v2255_v11 = vmul.f32 %v2253_v52, %v2211_v19 }
 0x7ef   : > { %2324 = vmatmul.f32.vlgmr.msra.gmra.mxu3 %v2255_v11 }
 0x86c   : > { %v2305_v20 = vpop.f32.mrf.mxu2 }
 0x872   : > { %v2325_v21 = vpop.f32.mrf.mxu3 }
 0x873   : > { %v2326_v54 = vadd.f32 %v2325_v21, %v2305_v20 }
 0x875   : > { %v2328_v3 = vadd.f32 %v2326_v54, %v3650_v22  ;;  %v2575_v22 = vld [vmem:[%s3890_s16] ss:$0 sm:$0xff] }
 0x877   : > { %v2329_v7 = vmul.f32 %v2328_v3, %v2328_v3 }
 0x879   : > { %v2330_v5 = vsel %vm1021_vm4, %v2329_v7, 0.0 }
 0x87a   : > { %2331 = vadd.xlane.f32.xlu0 %v2330_v5 }
 0x8ed   : > { %v2332_v24 = vpop.xlane.xlu0 %2331 }
 0x8ee   : > { %v2333_v14 = vmul.f32 %v2332_v24, %v2947_v42  ;;  %v2576_v42 = vld [vmem:[%s3891_s17] ss:$0 sm:$0xff] }
 0x8f0   : > { %v2334_v36 = vadd.f32 1e-05, %v2333_v14 }
 0x8f2   : > { %2693 = vrsqrt.f32 %v2334_v36  ;;  %vm2341_vm6 = vweird.f32 %v2334_v36 }
 0x8f8   : > { %v2694_v27 = vpop.eup %2693 }
 0x8f9   : > { %v2336_v2 = vmul.f32 %v2694_v27, %v2334_v36  ;;  %vm2342_vm5 = vweird.f32 %v2694_v27 }
 0x8fa   : > { %vm2343_vm7 = vmor %vm2341_vm6, %vm2342_vm5 }
 0x8fb   : > { %v2337_v28 = vmul.f32 %v2694_v27, %v2336_v2 }
 0x8fd   : > { %v2338_v16 = vmul.f32 0.5, %v2337_v28 }
 0x8ff   : > { %v2339_v31 = vsub.f32 1.5, %v2338_v16 }
 0x901   : > { %v2340_v29 = vmul.f32 %v2694_v27, %v2339_v31 }
 0x903   : > { %v2344_v15 = vsel %vm2343_vm7, %v2694_v27, %v2340_v29 }
 0x904   : > { %v2345_v57 = vmul.f32 %v2344_v15, %v2328_v3 }
 0x906   : > { %v2350_v39 = vmul.f32 %v2575_v22, %v2345_v57 }
 0x908   : > { %v2355_v44 = vmul.f32 %v2576_v42, %v2350_v39 }
 0x90a   : > { %v2356_v1 = vsel %vm1021_vm4, %v2355_v44, 0.0 }
 0x90b   : > { %2357 = vadd.xlane.f32.xlu1 %v2356_v1 }
 0x97e   : > { %v2358_v26 = vpop.xlane.xlu1 %2357 }
 0x97f   : > { %2360 = vst.msk [vmem:[%s592_s24] sm:$0xff] %vm2359_vm8, %v2358_v26 }
 0x980 PF: > { %s28_s27 = sadd.s32 1, %s2702_s27  }
 0x981   : > { %p25_p5 = scmp.ge.s32.totalorder %s28_s27, 4  }
 0x983   :  { %27 = sbr.rel (!%p25_p5) target bundleno = 4 (0x4), region = 125 }

</bundles_post_ra>
